<compile_context>
chip_gen: v6e
topology: v6e:2x2x1
jax: 0.10.0
libtpu: 0.0.40
codegen_flags: <defaults>
</compile_context>

<pallas_src>
import numpy as np

import jax
import jax.numpy as jnp
from jax.experimental import pallas as pl
from jax.experimental.pallas import tpu as pltpu

LATENT = 256
N_PRIMS = 4
N_TRANS = 8
PN_LAYERS = (3, 64, 128, 128, 256)
BN_EPS = 1e-5


# --------------------------------------------------------------------------
# Pallas kernel: per-point shared MLP + masked max-pool, points lane-dense.
# --------------------------------------------------------------------------
def _make_pointnet_kernel(n_valid, chunk):
    needs_mask = (n_valid % chunk) != 0

    def kernel(x_ref, w1c_ref, b1_ref, w2t_ref, b2_ref, w3t_ref, b3_ref,
               w4t_ref, b4_ref, feat_ref, acc_ref):
        c = pl.program_id(1)

        xc = x_ref[0]                                      # (3, chunk) f32
        # layer 1 (K = 3): three VPU broadcast FMAs instead of an MXU pass
        h = (w1c_ref[0] * xc[0:1, :]
             + w1c_ref[1] * xc[1:2, :]
             + w1c_ref[2] * xc[2:3, :]) + b1_ref[...]      # (64, chunk)
        h = jnp.maximum(h, 0.0)

        mm_dtype = w2t_ref.dtype          # bf16 fast path / f32 test path
        h = jnp.dot(w2t_ref[...], h.astype(mm_dtype),
                    preferred_element_type=jnp.float32) + b2_ref[...]
        h = jnp.maximum(h, 0.0)                            # (128, chunk)
        h = jnp.dot(w3t_ref[...], h.astype(mm_dtype),
                    preferred_element_type=jnp.float32) + b3_ref[...]
        h = jnp.maximum(h, 0.0)                            # (128, chunk)
        h = jnp.dot(w4t_ref[...], h.astype(mm_dtype),
                    preferred_element_type=jnp.float32) + b4_ref[...]
        # last per-point layer: folded BN only, no ReLU      (256, chunk)

        if needs_mask:
            # padded points must never win the max-pool
            lane = jax.lax.broadcasted_iota(jnp.int32, (1, h.shape[1]), 1)
            h = jnp.where(c * chunk + lane < n_valid, h, -jnp.inf)

        @pl.when(c == 0)
        def _init():
            acc_ref[...] = jnp.full(acc_ref.shape, -jnp.inf, acc_ref.dtype)

        # per-b running max: fold 128-lane groups into the (256, 128) scratch.
        # Pure VALU; no cross-lane XLU work and no (256, B) RMW in the inner loop.
        acc = acc_ref[...]
        for j in range(chunk // 128):
            acc = jnp.maximum(acc, h[:, j * 128:(j + 1) * 128])
        acc_ref[...] = acc

        @pl.when(c == pl.num_programs(1) - 1)
        def _finalize():
            # single cross-lane reduce + one tiny store per batch element
            feat_ref[...] = jnp.max(acc_ref[...], axis=1,
                                    keepdims=True).reshape(feat_ref.shape)

    return kernel


# --------------------------------------------------------------------------
# Parameters
# --------------------------------------------------------------------------
def init_params(key):
    keys = iter(jax.random.split(key, 16))

    def linear(cin, cout):
        kw, kb = jax.random.split(next(keys))
        bound = 1.0 / np.sqrt(cin)
        w = jax.random.uniform(kw, (cout, cin), jnp.float32, -bound, bound)
        b = jax.random.uniform(kb, (cout,), jnp.float32, -bound, bound)
        return w, b

    def bn(c):
        return dict(gamma=jnp.ones((c,), jnp.float32),
                    beta=jnp.zeros((c,), jnp.float32),
                    rmean=jnp.zeros((c,), jnp.float32),
                    rvar=jnp.ones((c,), jnp.float32))

    conv = []
    for cin, cout in zip(PN_LAYERS[:-1], PN_LAYERS[1:]):
        w, b = linear(cin, cout)
        conv.append(dict(w=w, b=b, bn=bn(cout)))

    fc_w, fc_b = linear(LATENT, LATENT)

    heads = {}
    for name, width in (("trans", 3 * N_TRANS), ("rot", 4 * N_TRANS),
                        ("size", 3 * N_PRIMS), ("shape", 2 * N_PRIMS),
                        ("deform", 2 * N_PRIMS), ("emb", N_PRIMS * N_TRANS)):
        w, b = linear(LATENT, width)
        heads[name] = dict(w=w, b=b)

    return dict(conv=conv, fc=dict(w=fc_w, b=fc_b), fc_bn=bn(LATENT), heads=heads)


def _fold_conv_params(p, use_bf16):
    """Fold eval-mode BatchNorm into the conv weights and transpose them for
    the channels-on-sublanes kernel layout."""
    def fold(w, b, bn):
        scale = bn["gamma"] * jax.lax.rsqrt(bn["rvar"] + BN_EPS)
        return w * scale[:, None], (b - bn["rmean"]) * scale + bn["beta"]

    fw, fb = [], []
    for layer in p["conv"]:
        w, b = fold(layer["w"], layer["b"], layer["bn"])
        fw.append(w)
        fb.append(b)

    mm_dtype = jnp.bfloat16 if use_bf16 else jnp.float32
    k = {"w1c": jnp.transpose(fw[0])[:, :, None],      # (3, 64, 1) f32 (VPU path)
         "b1": fb[0][:, None]}                          # (64, 1)
    for i in (1, 2, 3):
        k["w%dt" % (i + 1)] = fw[i].astype(mm_dtype)    # (C_out, C_in)
        k["b%d" % (i + 1)] = fb[i][:, None]             # (C_out, 1) f32
    return k


# --------------------------------------------------------------------------
# Tail (tiny; plain XLA so the kernel grid can be 'parallel' over B on v7x)
# --------------------------------------------------------------------------
def _bn_eval(h, bn):
    return (h - bn["rmean"]) / jnp.sqrt(bn["rvar"] + BN_EPS) * bn["gamma"] + bn["beta"]


def _decode_tail(feat, p):
    B = feat.shape[0]
    code = jnp.maximum(_bn_eval(feat @ p["fc"]["w"].T + p["fc"]["b"], p["fc_bn"]), 0.0)
    hd = p["heads"]

    def lin(name):
        return code @ hd[name]["w"].T + hd[name]["b"]

    trans = (jnp.tanh(lin("trans")) * 0.51).reshape(B, N_TRANS, 3)
    quat = lin("rot").reshape(B, N_TRANS, 4)
    rot = quat / jnp.linalg.norm(quat, axis=-1, keepdims=True)
    size = (jax.nn.sigmoid(lin("size")) * 0.5 + 0.03).reshape(B, N_PRIMS, 3)
    shape = (jax.nn.sigmoid(lin("shape")) * 1.1 + 0.4).reshape(B, N_PRIMS, 2)
    deform = (jnp.tanh(lin("deform")) * 0.9).reshape(B, N_PRIMS, 2)
    exist = jnp.ones((B, N_TRANS), code.dtype)   # params[-1] = new_ones((B, n_trans))
    emb = jax.nn.sigmoid(lin("emb")).reshape(B, N_PRIMS, N_TRANS)
    return code, (trans, rot, size, shape, deform, exist, emb)


# --------------------------------------------------------------------------
# Forward
# --------------------------------------------------------------------------
def _pick_chunk(n, cap):
    """Lane-dense chunk (multiple of 128, <= ~cap) minimizing pad waste."""
    cap = max(128, (cap // 128) * 128)
    n_chunks = -(-n // cap)
    chunk = -(-n // n_chunks)
    return ((chunk + 127) // 128) * 128


def symmsegnets_forward(x, params, use_bf16=True, chunk_cap=4096):
    B, N, C = x.shape
    assert C == 3
    chunk = _pick_chunk(N, chunk_cap)
    n_chunks = -(-N // chunk)
    n_pad = n_chunks * chunk

    k = _fold_conv_params(params, use_bf16)
    # NCL layout, exactly PyTorch's x.transpose(1, 2): point axis on lanes.
    x_t = jnp.transpose(x, (0, 2, 1)).astype(jnp.float32)          # (B, 3, N)
    if n_pad != N:
        x_t = jnp.pad(x_t, ((0, 0), (0, 0), (0, n_pad - N)))       # (B, 3, n_pad)

    weights = [k["w1c"], k["b1"], k["w2t"], k["b2"],
               k["w3t"], k["b3"], k["w4t"], k["b4"]]

    def whole(a):
        nd = a.ndim
        return pl.BlockSpec(a.shape, lambda b, c, nd=nd: (0,) * nd)

    feat3 = pl.pallas_call(
        _make_pointnet_kernel(N, chunk),
        grid=(B, n_chunks),
        in_specs=[pl.BlockSpec((1, 3, chunk), lambda b, c: (b, 0, c))]
                 + [whole(w) for w in weights],
        out_specs=pl.BlockSpec((1, LATENT, 1), lambda b, c: (b, 0, 0)),
        out_shape=jax.ShapeDtypeStruct((B, LATENT, 1), jnp.float32),
        scratch_shapes=[pltpu.VMEM((LATENT, 128), jnp.float32)],
        compiler_params=pltpu.CompilerParams(
            dimension_semantics=("parallel", "arbitrary"),
            vmem_limit_bytes=32 * 1024 * 1024),
    )(x_t, *weights)

    feat = feat3[:, :, 0]                       # (B, 256) max-pooled PointNet feature
    return _decode_tail(feat, params)


# --------------------------------------------------------------------------
# Pure-JAX reference (f32, same eval-mode BN assumption)
# --------------------------------------------------------------------------
def _reference_forward(x, p):
    B, N, _ = x.shape
    h = x.reshape(B * N, 3)
    for i, layer in enumerate(p["conv"]):
        h = h @ layer["w"].T + layer["b"]
        h = _bn_eval(h, layer["bn"])
        if i < len(p["conv"]) - 1:
            h = jnp.maximum(h, 0.0)
    feat = jnp.max(h.reshape(B, N, -1), axis=1)
    return _decode_tail(feat, p)


if __name__ == "__main__":
    key = jax.random.PRNGKey(0)
    kx, kp = jax.random.split(key)

    B, N = 2, 700                 # N not a multiple of 128 -> exercises pad+mask
    x = jax.random.normal(kx, (B, N, 3), jnp.float32)
    params = init_params(kp)

    fwd = jax.jit(symmsegnets_forward, static_argnames=("use_bf16", "chunk_cap"))

    # f32 multi-chunk variant: tight structural/numerical check of the kernel.
    latent32, prim32 = fwd(x, params, use_bf16=False, chunk_cap=256)
    jax.block_until_ready((latent32, prim32))

    # bf16 fast path with the default (large) chunk.
    latent16, prim16 = fwd(x, params, use_bf16=True)
    jax.block_until_ready((latent16, prim16))

    # shape checks (mirror SymmSegNets.forward outputs)
    assert latent16.shape == (B, LATENT)
    expected = ((B, N_TRANS, 3), (B, N_TRANS, 4), (B, N_PRIMS, 3),
                (B, N_PRIMS, 2), (B, N_PRIMS, 2), (B, N_TRANS),
                (B, N_PRIMS, N_TRANS))
    assert tuple(p_.shape for p_ in prim16) == expected

    ref_latent, ref_prim = _reference_forward(x, params)

    # f32 kernel variant: tight tolerance (matmul-precision noise only)
    assert bool(jnp.allclose(latent32, ref_latent, rtol=1e-2, atol=1e-2))
    for got, want in zip(prim32, ref_prim):
        assert bool(jnp.allclose(got, want, rtol=1e-2, atol=1e-2))

    # bf16 fast path: looser tolerance (bf16 activation casts in the point MLP)
    assert bool(jnp.allclose(latent16, ref_latent, rtol=5e-2, atol=5e-2))
    for got, want in zip(prim16, ref_prim):
        assert bool(jnp.allclose(got, want, rtol=5e-2, atol=5e-2))

    print("KERNEL_OK")
</pallas_src>

<mosaic_0001>
module attributes {stable_mosaic.version = 11 : i64} {
  func.func @kernel(%arg0: i32, %arg1: i32, %arg2: memref<1x3x256xf32, #tpu.memory_space<vmem>>, %arg3: memref<3x64x1xf32, #tpu.memory_space<vmem>>, %arg4: memref<64x1xf32, #tpu.memory_space<vmem>>, %arg5: memref<128x64xf32, #tpu.memory_space<vmem>>, %arg6: memref<128x1xf32, #tpu.memory_space<vmem>>, %arg7: memref<128x128xf32, #tpu.memory_space<vmem>>, %arg8: memref<128x1xf32, #tpu.memory_space<vmem>>, %arg9: memref<256x128xf32, #tpu.memory_space<vmem>>, %arg10: memref<256x1xf32, #tpu.memory_space<vmem>>, %arg11: memref<1x256x1xf32, #tpu.memory_space<vmem>>, %arg12: memref<256x128xf32, #tpu.memory_space<vmem>>) attributes {dimension_semantics = [#tpu.dimension_semantics<parallel>, #tpu.dimension_semantics<arbitrary>], iteration_bounds = array<i64: 2, 3>, scalar_prefetch = 0 : i64, scratch_operands = 1 : i64, tpu.core_type = #tpu.core_type<tc>, window_params = [{transform_indices = @transform_0, window_bounds = array<i64: 1, 3, 256>}, {pipeline_mode = #tpu.pipeline_mode<synchronous>, transform_indices = @transform_1, window_bounds = array<i64: 3, 64, 1>}, {pipeline_mode = #tpu.pipeline_mode<synchronous>, transform_indices = @transform_2, window_bounds = array<i64: 64, 1>}, {pipeline_mode = #tpu.pipeline_mode<synchronous>, transform_indices = @transform_3, window_bounds = array<i64: 128, 64>}, {pipeline_mode = #tpu.pipeline_mode<synchronous>, transform_indices = @transform_4, window_bounds = array<i64: 128, 1>}, {pipeline_mode = #tpu.pipeline_mode<synchronous>, transform_indices = @transform_5, window_bounds = array<i64: 128, 128>}, {pipeline_mode = #tpu.pipeline_mode<synchronous>, transform_indices = @transform_6, window_bounds = array<i64: 128, 1>}, {pipeline_mode = #tpu.pipeline_mode<synchronous>, transform_indices = @transform_7, window_bounds = array<i64: 256, 128>}, {pipeline_mode = #tpu.pipeline_mode<synchronous>, transform_indices = @transform_8, window_bounds = array<i64: 256, 1>}, {transform_indices = @transform_9, window_bounds = array<i64: 1, 256, 1>}]} {
    %c0 = arith.constant 0 : index
    %c0_0 = arith.constant 0 : index
    %c0_1 = arith.constant 0 : index
    %0 = vector.load %arg2[%c0, %c0_0, %c0_1] : memref<1x3x256xf32, #tpu.memory_space<vmem>>, vector<1x3x256xf32>
    %1 = vector.shape_cast %0 : vector<1x3x256xf32> to vector<3x256xf32>
    %c0_2 = arith.constant 0 : index
    %c0_3 = arith.constant 0 : index
    %c0_4 = arith.constant 0 : index
    %2 = vector.load %arg3[%c0_2, %c0_3, %c0_4] : memref<3x64x1xf32, #tpu.memory_space<vmem>>, vector<1x64x1xf32>
    %3 = vector.shape_cast %2 : vector<1x64x1xf32> to vector<64x1xf32>
    %4 = vector.extract_strided_slice %1 {offsets = [0, 0], sizes = [1, 256], strides = [1, 1]} : vector<3x256xf32> to vector<1x256xf32>
    %5 = vector.broadcast %3 : vector<64x1xf32> to vector<64x256xf32>
    %6 = vector.broadcast %4 : vector<1x256xf32> to vector<64x256xf32>
    %7 = arith.mulf %5, %6 : vector<64x256xf32>
    %c1 = arith.constant 1 : index
    %c0_5 = arith.constant 0 : index
    %c0_6 = arith.constant 0 : index
    %8 = vector.load %arg3[%c1, %c0_5, %c0_6] : memref<3x64x1xf32, #tpu.memory_space<vmem>>, vector<1x64x1xf32>
    %9 = vector.shape_cast %8 : vector<1x64x1xf32> to vector<64x1xf32>
    %10 = vector.extract_strided_slice %1 {offsets = [1, 0], sizes = [1, 256], strides = [1, 1]} : vector<3x256xf32> to vector<1x256xf32>
    %11 = vector.broadcast %9 : vector<64x1xf32> to vector<64x256xf32>
    %12 = vector.broadcast %10 : vector<1x256xf32> to vector<64x256xf32>
    %13 = arith.mulf %11, %12 : vector<64x256xf32>
    %14 = arith.addf %7, %13 : vector<64x256xf32>
    %c2 = arith.constant 2 : index
    %c0_7 = arith.constant 0 : index
    %c0_8 = arith.constant 0 : index
    %15 = vector.load %arg3[%c2, %c0_7, %c0_8] : memref<3x64x1xf32, #tpu.memory_space<vmem>>, vector<1x64x1xf32>
    %16 = vector.shape_cast %15 : vector<1x64x1xf32> to vector<64x1xf32>
    %17 = vector.extract_strided_slice %1 {offsets = [2, 0], sizes = [1, 256], strides = [1, 1]} : vector<3x256xf32> to vector<1x256xf32>
    %18 = vector.broadcast %16 : vector<64x1xf32> to vector<64x256xf32>
    %19 = vector.broadcast %17 : vector<1x256xf32> to vector<64x256xf32>
    %20 = arith.mulf %18, %19 : vector<64x256xf32>
    %21 = arith.addf %14, %20 : vector<64x256xf32>
    %c0_9 = arith.constant 0 : index
    %c0_10 = arith.constant 0 : index
    %22 = vector.load %arg4[%c0_9, %c0_10] : memref<64x1xf32, #tpu.memory_space<vmem>>, vector<64x1xf32>
    %23 = vector.broadcast %22 : vector<64x1xf32> to vector<64x256xf32>
    %24 = arith.addf %21, %23 : vector<64x256xf32>
    %cst = arith.constant 0.000000e+00 : f32
    %25 = vector.broadcast %cst : f32 to vector<64x256xf32>
    %26 = arith.maximumf %24, %25 : vector<64x256xf32>
    %c0_11 = arith.constant 0 : index
    %c0_12 = arith.constant 0 : index
    %27 = vector.load %arg5[%c0_11, %c0_12] : memref<128x64xf32, #tpu.memory_space<vmem>>, vector<128x64xf32>
    %cst_13 = arith.constant dense<0.000000e+00> : vector<128x256xf32>
    %28 = tpu.matmul %27, %26, %cst_13 {dimension_numbers = #tpu.dot_dimension_numbers<[1], [0], [0], [1], [0, 0, 1, 1], [], []>} : vector<128x64xf32>, vector<64x256xf32>, vector<128x256xf32> -> vector<128x256xf32>
    %c0_14 = arith.constant 0 : index
    %c0_15 = arith.constant 0 : index
    %29 = vector.load %arg6[%c0_14, %c0_15] : memref<128x1xf32, #tpu.memory_space<vmem>>, vector<128x1xf32>
    %30 = vector.broadcast %29 : vector<128x1xf32> to vector<128x256xf32>
    %31 = arith.addf %28, %30 : vector<128x256xf32>
    %cst_16 = arith.constant 0.000000e+00 : f32
    %32 = vector.broadcast %cst_16 : f32 to vector<128x256xf32>
    %33 = arith.maximumf %31, %32 : vector<128x256xf32>
    %c0_17 = arith.constant 0 : index
    %c0_18 = arith.constant 0 : index
    %34 = vector.load %arg7[%c0_17, %c0_18] : memref<128x128xf32, #tpu.memory_space<vmem>>, vector<128x128xf32>
    %cst_19 = arith.constant dense<0.000000e+00> : vector<128x256xf32>
    %35 = tpu.matmul %34, %33, %cst_19 {dimension_numbers = #tpu.dot_dimension_numbers<[1], [0], [0], [1], [0, 0, 1, 1], [], []>} : vector<128x128xf32>, vector<128x256xf32>, vector<128x256xf32> -> vector<128x256xf32>
    %c0_20 = arith.constant 0 : index
    %c0_21 = arith.constant 0 : index
    %36 = vector.load %arg8[%c0_20, %c0_21] : memref<128x1xf32, #tpu.memory_space<vmem>>, vector<128x1xf32>
    %37 = vector.broadcast %36 : vector<128x1xf32> to vector<128x256xf32>
    %38 = arith.addf %35, %37 : vector<128x256xf32>
    %cst_22 = arith.constant 0.000000e+00 : f32
    %39 = vector.broadcast %cst_22 : f32 to vector<128x256xf32>
    %40 = arith.maximumf %38, %39 : vector<128x256xf32>
    %c0_23 = arith.constant 0 : index
    %c0_24 = arith.constant 0 : index
    %41 = vector.load %arg9[%c0_23, %c0_24] : memref<256x128xf32, #tpu.memory_space<vmem>>, vector<256x128xf32>
    %cst_25 = arith.constant dense<0.000000e+00> : vector<256x256xf32>
    %42 = tpu.matmul %41, %40, %cst_25 {dimension_numbers = #tpu.dot_dimension_numbers<[1], [0], [0], [1], [0, 0, 1, 1], [], []>} : vector<256x128xf32>, vector<128x256xf32>, vector<256x256xf32> -> vector<256x256xf32>
    %c0_26 = arith.constant 0 : index
    %c0_27 = arith.constant 0 : index
    %43 = vector.load %arg10[%c0_26, %c0_27] : memref<256x1xf32, #tpu.memory_space<vmem>>, vector<256x1xf32>
    %44 = vector.broadcast %43 : vector<256x1xf32> to vector<256x256xf32>
    %45 = arith.addf %42, %44 : vector<256x256xf32>
    %46 = tpu.iota {dimensions = array<i32: 1>} : vector<1x256xi32>
    %c256_i32 = arith.constant 256 : i32
    %47 = arith.muli %arg1, %c256_i32 : i32
    %48 = vector.broadcast %47 : i32 to vector<1x256xi32>
    %49 = arith.addi %48, %46 : vector<1x256xi32>
    %c700_i32 = arith.constant 700 : i32
    %50 = vector.broadcast %c700_i32 : i32 to vector<1x256xi32>
    %51 = arith.cmpi slt, %49, %50 : vector<1x256xi32>
    %cst_28 = arith.constant 0xFF800000 : f32
    %52 = vector.shape_cast %51 : vector<1x256xi1> to vector<1x256xi1>
    %53 = vector.broadcast %52 : vector<1x256xi1> to vector<256x256xi1>
    %54 = vector.broadcast %cst_28 : f32 to vector<256x256xf32>
    %55 = arith.select %53, %45, %54 : vector<256x256xi1>, vector<256x256xf32>
    %c0_i32 = arith.constant 0 : i32
    %56 = arith.cmpi eq, %arg1, %c0_i32 : i32
    %57 = arith.extui %56 : i1 to i32
    %c0_i32_29 = arith.constant 0 : i32
    %58 = arith.cmpi ne, %57, %c0_i32_29 : i32
    scf.if %58 {
      %cst_35 = arith.constant 0xFF800000 : f32
      %68 = vector.broadcast %cst_35 : f32 to vector<256x128xf32>
      %c0_36 = arith.constant 0 : index
      %c0_37 = arith.constant 0 : index
      %69 = vector.load %arg12[%c0_36, %c0_37] : memref<256x128xf32, #tpu.memory_space<vmem>>, vector<256x128xf32>
      tpu.vector_store %arg12[%c0_36, %c0_37], %68 {strides = array<i32>} : memref<256x128xf32, #tpu.memory_space<vmem>>, vector<256x128xf32>,
    } else {
    }
    %c0_30 = arith.constant 0 : index
    %c0_31 = arith.constant 0 : index
    %59 = vector.load %arg12[%c0_30, %c0_31] : memref<256x128xf32, #tpu.memory_space<vmem>>, vector<256x128xf32>
    %60 = vector.extract_strided_slice %55 {offsets = [0, 0], sizes = [256, 128], strides = [1, 1]} : vector<256x256xf32> to vector<256x128xf32>
    %61 = arith.maximumf %59, %60 : vector<256x128xf32>
    %62 = vector.extract_strided_slice %55 {offsets = [0, 128], sizes = [256, 128], strides = [1, 1]} : vector<256x256xf32> to vector<256x128xf32>
    %63 = arith.maximumf %61, %62 : vector<256x128xf32>
    %c0_32 = arith.constant 0 : index
    %c0_33 = arith.constant 0 : index
    %64 = vector.load %arg12[%c0_32, %c0_33] : memref<256x128xf32, #tpu.memory_space<vmem>>, vector<256x128xf32>
    tpu.vector_store %arg12[%c0_32, %c0_33], %63 {strides = array<i32>} : memref<256x128xf32, #tpu.memory_space<vmem>>, vector<256x128xf32>,
    %c2_i32 = arith.constant 2 : i32
    %65 = arith.cmpi eq, %arg1, %c2_i32 : i32
    %66 = arith.extui %65 : i1 to i32
    %c0_i32_34 = arith.constant 0 : i32
    %67 = arith.cmpi ne, %66, %c0_i32_34 : i32
    scf.if %67 {
      %c0_35 = arith.constant 0 : index
      %c0_36 = arith.constant 0 : index
      %68 = vector.load %arg12[%c0_35, %c0_36] : memref<256x128xf32, #tpu.memory_space<vmem>>, vector<256x128xf32>
      %cst_37 = arith.constant dense<0xFF800000> : vector<256xf32>
      %69 = vector.multi_reduction <maximumf>, %68, %cst_37 [1] : vector<256x128xf32> to vector<256xf32>
      %70 = vector.shape_cast %69 : vector<256xf32> to vector<256x1xf32>
      %71 = vector.shape_cast %70 : vector<256x1xf32> to vector<1x256x1xf32>
      %c0_38 = arith.constant 0 : index
      %c0_39 = arith.constant 0 : index
      %c0_40 = arith.constant 0 : index
      %72 = vector.load %arg11[%c0_38, %c0_39, %c0_40] : memref<1x256x1xf32, #tpu.memory_space<vmem>>, vector<1x256x1xf32>
      tpu.vector_store %arg11[%c0_38, %c0_39, %c0_40], %71 {strides = array<i32>} : memref<1x256x1xf32, #tpu.memory_space<vmem>>, vector<1x256x1xf32>,
    } else {
    }
    return
  }
  func.func @transform_0(%arg0: i32, %arg1: i32) -> (i32, i32, i32) {
    %c0_i32 = arith.constant 0 : i32
    %c0_i32_0 = arith.constant 0 : i32
    return %arg0, %c0_i32, %arg1 : i32, i32, i32
  }
  func.func @transform_1(%arg0: i32, %arg1: i32) -> (i32, i32, i32) {
    %c0_i32 = arith.constant 0 : i32
    %c0_i32_0 = arith.constant 0 : i32
    %c0_i32_1 = arith.constant 0 : i32
    %c0_i32_2 = arith.constant 0 : i32
    return %c0_i32, %c0_i32_0, %c0_i32_1 : i32, i32, i32
  }
  func.func @transform_2(%arg0: i32, %arg1: i32) -> (i32, i32) {
    %c0_i32 = arith.constant 0 : i32
    %c0_i32_0 = arith.constant 0 : i32
    %c0_i32_1 = arith.constant 0 : i32
    return %c0_i32, %c0_i32_0 : i32, i32
  }
  func.func @transform_3(%arg0: i32, %arg1: i32) -> (i32, i32) {
    %c0_i32 = arith.constant 0 : i32
    %c0_i32_0 = arith.constant 0 : i32
    %c0_i32_1 = arith.constant 0 : i32
    return %c0_i32, %c0_i32_0 : i32, i32
  }
  func.func @transform_4(%arg0: i32, %arg1: i32) -> (i32, i32) {
    %c0_i32 = arith.constant 0 : i32
    %c0_i32_0 = arith.constant 0 : i32
    %c0_i32_1 = arith.constant 0 : i32
    return %c0_i32, %c0_i32_0 : i32, i32
  }
  func.func @transform_5(%arg0: i32, %arg1: i32) -> (i32, i32) {
    %c0_i32 = arith.constant 0 : i32
    %c0_i32_0 = arith.constant 0 : i32
    %c0_i32_1 = arith.constant 0 : i32
    return %c0_i32, %c0_i32_0 : i32, i32
  }
  func.func @transform_6(%arg0: i32, %arg1: i32) -> (i32, i32) {
    %c0_i32 = arith.constant 0 : i32
    %c0_i32_0 = arith.constant 0 : i32
    %c0_i32_1 = arith.constant 0 : i32
    return %c0_i32, %c0_i32_0 : i32, i32
  }
  func.func @transform_7(%arg0: i32, %arg1: i32) -> (i32, i32) {
    %c0_i32 = arith.constant 0 : i32
    %c0_i32_0 = arith.constant 0 : i32
    %c0_i32_1 = arith.constant 0 : i32
    return %c0_i32, %c0_i32_0 : i32, i32
  }
  func.func @transform_8(%arg0: i32, %arg1: i32) -> (i32, i32) {
    %c0_i32 = arith.constant 0 : i32
    %c0_i32_0 = arith.constant 0 : i32
    %c0_i32_1 = arith.constant 0 : i32
    return %c0_i32, %c0_i32_0 : i32, i32
  }
  func.func @transform_9(%arg0: i32, %arg1: i32) -> (i32, i32, i32) {
    %c0_i32 = arith.constant 0 : i32
    %c0_i32_0 = arith.constant 0 : i32
    %c0_i32_1 = arith.constant 0 : i32
    return %arg0, %c0_i32, %c0_i32_0 : i32, i32, i32
  }
}

</mosaic_0001>

<bundles_post_ra>
// kernel: symmsegnets_forward.1
= control target key start
LH: loop header
LB: loop body
LE: loop exit
PB: predicated region body
PF: predicated region fallthrough
CT: control target
= control target key end

     0   :  { %s2527_s30 = smov 0   ;;  %s2529_s10 = smov 0   ;;  %s3788_s0 = inlined_call_operand.vmem [shape: f32[2,3,768], index: 0, kind: input, shape index: {}]   ;;  %s3789_s1 = inlined_call_operand.vmem [shape: f32[3,64,1], index: 1, kind: input, shape index: {}]   ;;  %s3790_s2 = inlined_call_operand.vmem [shape: f32[64,1], index: 2, kind: input, shape index: {}]   ;;  %s3791_s3 = inlined_call_operand.vmem [shape: f32[128,64], index: 3, kind: input, shape index: {}]   ;;  %s3792_s4 = inlined_call_operand.vmem [shape: f32[128,1], index: 4, kind: input, shape index: {}]   ;;  %s3793_s5 = inlined_call_operand.vmem [shape: f32[128,128], index: 5, kind: input, shape index: {}]   ;;  %s3794_s6 = inlined_call_operand.vmem [shape: f32[128,1], index: 6, kind: input, shape index: {}]   ;;  %s3795_s7 = inlined_call_operand.vmem [shape: f32[256,128], index: 7, kind: input, shape index: {}]   ;;  %s3796_s8 = inlined_call_operand.vmem [shape: f32[256,1], index: 8, kind: input, shape index: {}]   ;;  %s3797_s9 = inlined_call_operand.vmem [shape: f32[2,256,1], index: 9, kind: output, shape index: {}]  }
   0x1   :  { %s2531_s11 = smov 0   ;;  %s2533_s12 = smov 0  }
   0x2   :  { %s2535_s13 = smov 0  }
   0x3 LB: > { %s28_s14 = sadd.s32 1, %s2464_s11  ;;  %s31_s15 = sadd.s32 1, %s2468_s12  ;;  %s2472_s13 = sphi %s2535_s13, %s19_s13   ;;  %s2468_s12 = sphi %s2533_s12, %s3833_s12   ;;  %s2464_s11 = sphi %s2531_s11, %s3832_s11   ;;  %s2460_s10 = sphi %s2529_s10, %s3831_s10   ;;  %s2456_s30 = sphi %s2527_s30, %s3830_s30  }
   0x4   : > { %p29_p0 = scmp.ge.s32.totalorder %s28_s14, 3  ;;  %p2313_p1 = scmp.ge.s32.totalorder %s2472_s13, 1 }
   0x5   : > { %p306_p2 = scmp.lt.s32.totalorder %s2472_s13, 7 }
   0x6   : > { %s3835_s14 = smov (%p29_p0, %s28_s14), 0  ;;  %s3837_s15 = smov (!%p29_p0, %s31_s15), %s2468_s12 }
   0x7   : > { %p307_p3 = pnand %p2313_p1, %p306_p2  ;;  %p33_p4 = scmp.ge.s32.totalorder %s3837_s15, 2 }
   0x9   : > { %s3839_s15 = smov (%p33_p4, %s3837_s15), 0  ;;  %310 = sbr.rel (%p307_p3) target bundleno = 1297 (0x511), region = 56 }
   0xe   : > { %v369_v0 = vld [vmem:[%s3789_s1 + $0x38] sm:$0xff]  ;;  %v368_v1 = vld [vmem:[%s3789_s1 + $0x30] sm:$0xff]  ;;  %p347_p5 = scmp.lt.s32.totalorder %s2460_s10, 1  ;;  %v2474_v2 = vmov 0   ;;  %v367_v6 = vld [vmem:[%s3789_s1 + $0x28] sm:$0xff]  ;;  %v2475_v35 = vmov 0.0  }
   0xf   : > { %2433 = vset.pattern.permute.xlu1 %v2474_v2  ;;  %2432 = vset.pattern.permute.xlu0 %v2474_v2  ;;  %v2325_v3 = vld [vmem:[%s3789_s1 + $0x78] sm:$0xff]  ;;  %v2324_v4 = vld [vmem:[%s3789_s1 + $0x70] sm:$0xff]  ;;  %v2323_v7 = vld [vmem:[%s3789_s1 + $0x68] sm:$0xff]  ;;  %s2314_s28 = sshll.u32 %s2456_s30, 1  ;;  %vm835_vm0 = vcmask 523264   ;;  %s2350_s20 = sshll.u32 %s2456_s30, 8 }
  0x10   : > { %407 = vperm.xlu0 %2432, %v369_v0   ;;  %402 = vperm.xlu1 %2433, %v368_v1   ;;  %s3841_s10 = smov (!%p347_p5, %s2460_s10), 1  ;;  %v2333_v5 = vld [vmem:[%s3789_s1 + $0xb8] sm:$0xff]  ;;  %v2332_v8 = vld [vmem:[%s3789_s1 + $0xb0] sm:$0xff]  ;;  %v2322_v9 = vld [vmem:[%s3789_s1 + $0x60] sm:$0xff]  ;;  %p349_p6 = scmp.lt.s32.totalorder %s2314_s28, 5  ;;  %v411_v0 = vlaneseq }
  0x11   : > { %s2355_s24 = sshll.u32 %s3841_s10, 8  ;;  %v366_v10 = vld [vmem:[%s3789_s1 + $0x20] sm:$0xff]  ;;  %v650_v11 = vld [vmem:[%s3790_s2 + $0x38] sm:$0xff]  ;;  %v2331_v12 = vld [vmem:[%s3789_s1 + $0xa8] sm:$0xff]  ;;  %948 = vmatprep.mubr.f32.mxu0 %v2475_v35  ;;  %1253 = vmatprep.mubr.f32.mxu1 %v2475_v35  ;;  %s2388_s23 = smul.u32 6, %s3841_s10 }
  0x12   : > { %s2577_s27 = scalar_lea.vmem %s3797_s9, %s2355_s24  ;;  %v2321_v13 = vld [vmem:[%s3789_s1 + $0x58] sm:$0xff]  ;;  %v649_v15 = vld [vmem:[%s3790_s2 + $0x30] sm:$0xff]  ;;  %v2330_v16 = vld [vmem:[%s3789_s1 + $0xa0] sm:$0xff]  ;;  %s3843_s28 = smov (!%p349_p6, %s2314_s28), 5  ;;  %v412_v2 = vshrl.u32 %v411_v0, 7 }
  0x13   : > { %v365_v14 = vld [vmem:[%s3789_s1 + $0x18] sm:$0xff]  ;;  %v2320_v17 = vld [vmem:[%s3789_s1 + $0x50] sm:$0xff]  ;;  %v648_v19 = vld [vmem:[%s3790_s2 + $0x28] sm:$0xff]  ;;  %s352_s16 = sadd.s32 %s2388_s23, %s3843_s28  ;;  %p2351_p7 = scmp.ne.s32.totalorder %s2456_s30, 0 }
  0x14   : > { %491 = vperm.xlu0 %2432, %v2325_v3   ;;  %486 = vperm.xlu1 %2433, %v2324_v4   ;;  %v364_v18 = vld [vmem:[%s3789_s1 + $0x10] sm:$0xff]  ;;  %v2329_v20 = vld [vmem:[%s3789_s1 + $0x98] sm:$0xff]  ;;  %v2319_v21 = vld [vmem:[%s3789_s1 + $0x48] sm:$0xff]  ;;  %s2315_s17 = sshll.u32 %s352_s16, 2 }
  0x15   : > { %v363_v22 = vld [vmem:[%s3789_s1 + $0x8] sm:$0xff]  ;;  %v647_v23 = vld [vmem:[%s3790_s2 + $0x20] sm:$0xff]  ;;  %v2328_v24 = vld [vmem:[%s3789_s1 + $0x90] sm:$0xff]  ;;  %s354_s28 = scalar_lea.vmem %s3788_s0, %s2315_s17 }
  0x16   : > { %v2318_v25 = vld [vmem:[%s3789_s1 + $0x40] sm:$0xff]  ;;  %v646_v27 = vld [vmem:[%s3790_s2 + $0x18] sm:$0xff]  ;;  %v2327_v28 = vld [vmem:[%s3789_s1 + $0x88] sm:$0xff] }
  0x17   : > { %v362_v26 = vld [vmem:[%s3789_s1] sm:$0xff]  ;;  %v645_v29 = vld [vmem:[%s3790_s2 + $0x10] sm:$0xff]  ;;  %v644_v32 = vld [vmem:[%s3790_s2 + $0x8] sm:$0xff] }
  0x18   : > { %590 = vperm.xlu0 %2432, %v2333_v5   ;;  %397 = vperm.xlu1 %2433, %v367_v6   ;;  %v2326_v30 = vld [vmem:[%s3789_s1 + $0x80] sm:$0xff]  ;;  %v753_v33 = vld [vmem:[%s3792_s4 + $0x70] sm:$0xff]  ;;  %v754_v34 = vld [vmem:[%s3792_s4 + $0x78] sm:$0xff]  ;;  %v496_v6 = vsub.s32 1, %v412_v2 }
  0x19   : > { %v643_v31 = vld [vmem:[%s3790_s2] sm:$0xff]  ;;  %v752_v37 = vld [vmem:[%s3792_s4 + $0x68] sm:$0xff]  ;;  %v749_v38 = vld [vmem:[%s3792_s4 + $0x50] sm:$0xff] }
  0x1a   : > { %v751_v36 = vld [vmem:[%s3792_s4 + $0x60] sm:$0xff]  ;;  %v750_v39 = vld [vmem:[%s3792_s4 + $0x58] sm:$0xff]  ;;  %v748_v41 = vld [vmem:[%s3792_s4 + $0x48] sm:$0xff] }
  0x1b   : > { %v747_v40 = vld [vmem:[%s3792_s4 + $0x40] sm:$0xff]  ;;  %v745_v42 = vld [vmem:[%s3792_s4 + $0x30] sm:$0xff]  ;;  %v746_v43 = vld [vmem:[%s3792_s4 + $0x38] sm:$0xff] }
  0x1c   : > { %481 = vperm.xlu0 %2432, %v2323_v7   ;;  %585 = vperm.xlu1 %2433, %v2332_v8   ;;  %v743_v44 = vld [vmem:[%s3792_s4 + $0x20] sm:$0xff]  ;;  %v744_v45 = vld [vmem:[%s3792_s4 + $0x28] sm:$0xff]  ;;  %v741_v46 = vld [vmem:[%s3792_s4 + $0x10] sm:$0xff]  ;;  %v500_v7 = vsub.s32 5, %v412_v2 }
  0x1d   : > { %v742_v47 = vld [vmem:[%s3792_s4 + $0x18] sm:$0xff]  ;;  %v739_v48 = vld [vmem:[%s3792_s4] sm:$0xff]  ;;  %v740_v49 = vld [vmem:[%s3792_s4 + $0x8] sm:$0xff] }
  0x1e   : > { %v1107_v50 = vld [vmem:[%s3794_s6 + $0x70] sm:$0xff]  ;;  %v1108_v51 = vld [vmem:[%s3794_s6 + $0x78] sm:$0xff]  ;;  %v1105_v52 = vld [vmem:[%s3794_s6 + $0x60] sm:$0xff] }
  0x1f   : > { %v1106_v53 = vld [vmem:[%s3794_s6 + $0x68] sm:$0xff]  ;;  %v1103_v54 = vld [vmem:[%s3794_s6 + $0x50] sm:$0xff]  ;;  %v1104_v55 = vld [vmem:[%s3794_s6 + $0x58] sm:$0xff] }
  0x20   : > { %476 = vperm.xlu1 %2433, %v2322_v9   ;;  %392 = vperm.xlu0 %2432, %v366_v10   ;;  %v1101_v56 = vld [vmem:[%s3794_s6 + $0x40] sm:$0xff]  ;;  %v1102_v57 = vld [vmem:[%s3794_s6 + $0x48] sm:$0xff]  ;;  %v1099_v58 = vld [vmem:[%s3794_s6 + $0x30] sm:$0xff]  ;;  %v413_v9 = vsub.s32 0, %v412_v2  ;;  %v417_v10 = vsub.s32 4, %v412_v2 }
  0x21   : > { %v1100_v59 = vld [vmem:[%s3794_s6 + $0x38] sm:$0xff]  ;;  %v1097_v60 = vld [vmem:[%s3794_s6 + $0x20] sm:$0xff]  ;;  %v1098_v61 = vld [vmem:[%s3794_s6 + $0x28] sm:$0xff] }
  0x22   : > { %v1095_v62 = vld [vmem:[%s3794_s6 + $0x10] sm:$0xff]  ;;  %v1096_v63 = vld [vmem:[%s3794_s6 + $0x18] sm:$0xff]  ;;  %v1093_v1 = vld [vmem:[%s3794_s6] sm:$0xff] }
  0x23   : > { %v1094_v3 = vld [vmem:[%s3794_s6 + $0x8] sm:$0xff] }
  0x24   : > { %688 = vperm.xlu1 %2433, %v650_v11   ;;  %580 = vperm.xlu0 %2432, %v2331_v12   ;;  %v1415_v8 = vld [vmem:[%s3796_s8 + $0x8] sm:$0xff]  ;;  %v1414_v11 = vld [vmem:[%s3796_s8] sm:$0xff]  ;;  %v595_v12 = vsub.s32 2, %v412_v2 }
  0x28   : > { %471 = vperm.xlu1 %2433, %v2321_v13   ;;  %387 = vperm.xlu0 %2432, %v365_v14   ;;  %v599_v13 = vsub.s32 6, %v412_v2  ;;  %v361_v14 = vld [vmem:[%s354_s28] sm:$0x77]  ;;  %v1424_v2 = vld [vmem:[%s3796_s8 + $0x50] sm:$0xff] }
  0x2c   : > { %683 = vperm.xlu1 %2433, %v649_v15   ;;  %575 = vperm.xlu0 %2432, %v2330_v16  }
  0x30   : > { %466 = vperm.xlu1 %2433, %v2320_v17   ;;  %382 = vperm.xlu0 %2432, %v364_v18   ;;  %v497_v17 = vrot.slane %v361_v14, %v496_v6  ;;  %v501_v18 = vrot.slane %v361_v14, %v500_v7 }
  0x34   : > { %678 = vperm.xlu1 %2433, %v648_v19   ;;  %570 = vperm.xlu0 %2432, %v2329_v20   ;;  %v1417_v19 = vld [vmem:[%s3796_s8 + $0x18] sm:$0xff]  ;;  %v414_v20 = vrot.slane %v361_v14, %v413_v9 }
  0x38   : > { %461 = vperm.xlu1 %2433, %v2319_v21   ;;  %377 = vperm.xlu0 %2432, %v363_v22   ;;  %v418_v21 = vrot.slane %v361_v14, %v417_v10  ;;  %v596_v22 = vrot.slane %v361_v14, %v595_v12 }
  0x3c   : > { %673 = vperm.xlu1 %2433, %v647_v23   ;;  %565 = vperm.xlu0 %2432, %v2328_v24   ;;  %v600_v23 = vrot.slane %v361_v14, %v599_v13  ;;  %v1416_v24 = vld [vmem:[%s3796_s8 + $0x10] sm:$0xff] }
  0x40   : > { %456 = vperm.xlu1 %2433, %v2318_v25   ;;  %372 = vperm.xlu0 %2432, %v362_v26  }
  0x44   : > { %668 = vperm.xlu1 %2433, %v646_v27   ;;  %560 = vperm.xlu0 %2432, %v2327_v28   ;;  %v2783_v27 = vrot.slane %v497_v17, %v496_v6  ;;  %v2785_v28 = vrot.slane %v501_v18, %v496_v6 }
  0x48   : > { %663 = vperm.xlu1 %2433, %v645_v29   ;;  %555 = vperm.xlu0 %2432, %v2326_v30   ;;  %v1419_v29 = vld [vmem:[%s3796_s8 + $0x28] sm:$0xff]  ;;  %v2790_v30 = vrot.slane %v414_v20, %v413_v9 }
  0x4c   : > { %653 = vperm.xlu1 %2433, %v643_v31   ;;  %658 = vperm.xlu0 %2432, %v644_v32   ;;  %v2792_v31 = vrot.slane %v418_v21, %v413_v9  ;;  %v2794_v32 = vrot.slane %v596_v22, %v595_v12  ;;  %v1427_v9 = vld [vmem:[%s3796_s8 + $0x68] sm:$0xff]  ;;  %v1429_v21 = vld [vmem:[%s3796_s8 + $0x78] sm:$0xff] }
  0x50   : > { %827 = vperm.xlu1 %2433, %v753_v33   ;;  %832 = vperm.xlu0 %2432, %v754_v34   ;;  %v2796_v33 = vrot.slane %v600_v23, %v595_v12  ;;  %v1418_v34 = vld [vmem:[%s3796_s8 + $0x20] sm:$0xff] }
  0x51   : > { %v1426_v12 = vld [vmem:[%s3796_s8 + $0x60] sm:$0xff] }
  0x54   : > { %817 = vperm.xlu1 %2433, %v751_v36   ;;  %822 = vperm.xlu0 %2432, %v752_v37  }
  0x58   : > { %807 = vperm.xlu1 %2433, %v749_v38   ;;  %812 = vperm.xlu0 %2432, %v750_v39  }
  0x5c   : > { %797 = vperm.xlu1 %2433, %v747_v40   ;;  %802 = vperm.xlu0 %2432, %v748_v41   ;;  %v1421_v40 = vld [vmem:[%s3796_s8 + $0x38] sm:$0xff] }
  0x60   : > { %787 = vperm.xlu1 %2433, %v745_v42   ;;  %792 = vperm.xlu0 %2432, %v746_v43  }
  0x64   : > { %777 = vperm.xlu1 %2433, %v743_v44   ;;  %782 = vperm.xlu0 %2432, %v744_v45   ;;  %v1420_v45 = vld [vmem:[%s3796_s8 + $0x30] sm:$0xff] }
  0x68   : > { %767 = vperm.xlu1 %2433, %v741_v46   ;;  %772 = vperm.xlu0 %2432, %v742_v47  }
  0x6c   : > { %757 = vperm.xlu1 %2433, %v739_v48   ;;  %762 = vperm.xlu0 %2432, %v740_v49  }
  0x70   : > { %1181 = vperm.xlu1 %2433, %v1107_v50   ;;  %1186 = vperm.xlu0 %2432, %v1108_v51   ;;  %v1423_v50 = vld [vmem:[%s3796_s8 + $0x48] sm:$0xff] }
  0x74   : > { %1171 = vperm.xlu1 %2433, %v1105_v52   ;;  %1176 = vperm.xlu0 %2432, %v1106_v53   ;;  %v1422_v52 = vld [vmem:[%s3796_s8 + $0x40] sm:$0xff] }
  0x78   : > { %1161 = vperm.xlu1 %2433, %v1103_v54   ;;  %1166 = vperm.xlu0 %2432, %v1104_v55  }
  0x7c   : > { %1151 = vperm.xlu1 %2433, %v1101_v56   ;;  %1156 = vperm.xlu0 %2432, %v1102_v57  }
  0x80   : > { %1141 = vperm.xlu1 %2433, %v1099_v58   ;;  %1146 = vperm.xlu0 %2432, %v1100_v59  }
  0x84   : > { %1131 = vperm.xlu1 %2433, %v1097_v60   ;;  %1136 = vperm.xlu0 %2432, %v1098_v61  }
  0x88   : > { %1121 = vperm.xlu1 %2433, %v1095_v62   ;;  %1126 = vperm.xlu0 %2432, %v1096_v63   ;;  %v1425_v62 = vld [vmem:[%s3796_s8 + $0x58] sm:$0xff] }
  0x8b   : > { %v408_v4 = vpop.permute.xlu0 %407  ;;  %v2764_v5 = vpop.permute.xlu1 %402 }
  0x8c   : > { %1111 = vperm.xlu1 %2433, %v1093_v1   ;;  %1116 = vperm.xlu0 %2432, %v1094_v3   ;;  %v443_v41 = vmul.f32 %v2790_v30, %v408_v4  ;;  %v444_v42 = vmul.f32 %v2792_v31, %v408_v4  ;;  %v441_v60 = vmul.f32 %v2790_v30, %v2764_v5 }
  0x8d   : > { %v442_v61 = vmul.f32 %v2792_v31, %v2764_v5 }
  0x8f   : > { %v492_v15 = vpop.permute.xlu0 %491  ;;  %v487_v16 = vpop.permute.xlu1 %486 }
  0x90   : > { %1453 = vperm.xlu1 %2433, %v1415_v8   ;;  %1448 = vperm.xlu0 %2432, %v1414_v11   ;;  %v526_v38 = vmul.f32 %v2783_v27, %v492_v15  ;;  %v527_v39 = vmul.f32 %v2785_v28, %v492_v15  ;;  %v524_v56 = vmul.f32 %v2783_v27, %v487_v16 }
  0x91   : > { %v525_v57 = vmul.f32 %v2785_v28, %v487_v16 }
  0x92   : > { %v542_v48 = vadd.f32 %v526_v38, %v443_v41  ;;  %v543_v49 = vadd.f32 %v527_v39, %v444_v42  ;;  %v540_v5 = vadd.f32 %v524_v56, %v441_v60  ;;  %v1430_v41 = vld [vmem:[%s3796_s8 + $0x80] sm:$0xff]  ;;  %v1432_v56 = vld [vmem:[%s3796_s8 + $0x90] sm:$0xff]  ;;  %v1435_v60 = vld [vmem:[%s3796_s8 + $0xa8] sm:$0xff] }
  0x93   : > { %v591_v25 = vpop.permute.xlu0 %590  ;;  %v2781_v26 = vpop.permute.xlu1 %397  ;;  %v541_v8 = vadd.f32 %v525_v57, %v442_v61 }
  0x94   : > { %1463 = vperm.xlu1 %2433, %v1417_v19   ;;  %1458 = vperm.xlu0 %2432, %v1416_v24   ;;  %v625_v43 = vmul.f32 %v2794_v32, %v591_v25  ;;  %v626_v44 = vmul.f32 %v2796_v33, %v591_v25  ;;  %v439_v19 = vmul.f32 %v2790_v30, %v2781_v26 }
  0x95   : > { %v440_v20 = vmul.f32 %v2792_v31, %v2781_v26  ;;  %v1431_v26 = vld [vmem:[%s3796_s8 + $0x88] sm:$0xff] }
  0x96   : > { %v641_v51 = vadd.f32 %v625_v43, %v542_v48  ;;  %v642_v53 = vadd.f32 %v626_v44, %v543_v49 }
  0x97   : > { %v482_v36 = vpop.permute.xlu0 %481  ;;  %v586_v37 = vpop.permute.xlu1 %585 }
  0x98   : > { %1473 = vperm.xlu1 %2433, %v1419_v29   ;;  %1468 = vperm.xlu0 %2432, %v1418_v34   ;;  %v623_v63 = vmul.f32 %v2794_v32, %v586_v37  ;;  %v624_v1 = vmul.f32 %v2796_v33, %v586_v37  ;;  %v522_v15 = vmul.f32 %v2783_v27, %v482_v36  ;;  %v1428_v29 = vld [vmem:[%s3796_s8 + $0x70] sm:$0xff] }
  0x99   : > { %v523_v16 = vmul.f32 %v2785_v28, %v482_v36 }
  0x9a   : > { %v639_v10 = vadd.f32 %v623_v63, %v540_v5  ;;  %v640_v11 = vadd.f32 %v624_v1, %v541_v8  ;;  %v538_v37 = vadd.f32 %v522_v15, %v439_v19 }
  0x9b   : > { %v2813_v46 = vpop.permute.xlu1 %476  ;;  %v2815_v47 = vpop.permute.xlu0 %392  ;;  %v539_v38 = vadd.f32 %v523_v16, %v440_v20 }
  0x9c   : > { %1483 = vperm.xlu1 %2433, %v1421_v40   ;;  %1478 = vperm.xlu0 %2432, %v1420_v45   ;;  %v520_v42 = vmul.f32 %v2783_v27, %v2813_v46  ;;  %v521_v43 = vmul.f32 %v2785_v28, %v2813_v46  ;;  %v437_v48 = vmul.f32 %v2790_v30, %v2815_v47 }
  0x9d   : > { %v438_v49 = vmul.f32 %v2792_v31, %v2815_v47 }
  0x9f   : > { %v689_v54 = vpop.permute.xlu1 %688  ;;  %v581_v55 = vpop.permute.xlu0 %580 }
  0xa0   : > { %v705_v58 = vadd.f32 %v689_v54, %v641_v51  ;;  %1493 = vperm.xlu1 %2433, %v1423_v50   ;;  %v706_v59 = vadd.f32 %v689_v54, %v642_v53  ;;  %1488 = vperm.xlu0 %2432, %v1422_v52   ;;  %v621_v22 = vmul.f32 %v2794_v32, %v581_v55  ;;  %v1433_v52 = vld [vmem:[%s3796_s8 + $0x98] sm:$0xff] }
  0xa1   : > { %v622_v23 = vmul.f32 %v2796_v33, %v581_v55 }
  0xa2   : > { %v722_v3 = vmax.f32 %v706_v59, 0.0  ;;  %v721_v4 = vmax.f32 %v705_v58, 0.0  ;;  %v637_v39 = vadd.f32 %v621_v22, %v538_v37  ;;  %v536_v58 = vadd.f32 %v520_v42, %v437_v48  ;;  %v1439_v37 = vld [vmem:[%s3796_s8 + $0xc8] sm:$0xff] }
  0xa3   : > { %v2837_v6 = vpop.permute.xlu1 %471  ;;  %v2839_v7 = vpop.permute.xlu0 %387  ;;  %v638_v40 = vadd.f32 %v622_v23, %v539_v38  ;;  %v537_v59 = vadd.f32 %v521_v43, %v438_v49 }
  0xa4   : > { %1503 = vperm.xlu1 %2433, %v1425_v62   ;;  %1498 = vperm.xlu0 %2432, %v1424_v2   ;;  %v518_v61 = vmul.f32 %v2783_v27, %v2837_v6  ;;  %v435_v62 = vmul.f32 %v2790_v30, %v2839_v7  ;;  %v1434_v2 = vld [vmem:[%s3796_s8 + $0xa0] sm:$0xff] }
  0xa5   : > { %900 = vmatprep.subr.mxu0 %v722_v3  ;;  %v519_v3 = vmul.f32 %v2785_v28, %v2837_v6 }
  0xa6   : > { %901 = vmatpush1.msra.mxu0 %v721_v4  ;;  %v436_v4 = vmul.f32 %v2792_v31, %v2839_v7  ;;  %v1436_v7 = vld [vmem:[%s3796_s8 + $0xb0] sm:$0xff] }
  0xa7   : > { %v684_v13 = vpop.permute.xlu1 %683  ;;  %v576_v14 = vpop.permute.xlu0 %575 }
  0xa8   : > { %v703_v17 = vadd.f32 %v684_v13, %v639_v10  ;;  %v704_v18 = vadd.f32 %v684_v13, %v640_v11  ;;  %1513 = vperm.xlu1 %2433, %v1427_v9   ;;  %1508 = vperm.xlu0 %2432, %v1426_v12   ;;  %v619_v53 = vmul.f32 %v2794_v32, %v576_v14  ;;  %v1437_v13 = vld [vmem:[%s3796_s8 + $0xb8] sm:$0xff] }
  0xa9   : > { %v620_v46 = vmul.f32 %v2796_v33, %v576_v14  ;;  %v534_v14 = vadd.f32 %v518_v61, %v435_v62  ;;  %v535_v16 = vadd.f32 %v519_v3, %v436_v4  ;;  %v1443_v3 = vld [vmem:[%s3796_s8 + $0xe8] sm:$0xff] }
  0xaa   : > { %v719_v24 = vmax.f32 %v703_v17, 0.0  ;;  %v720_v25 = vmax.f32 %v704_v18, 0.0  ;;  %v635_v63 = vadd.f32 %v619_v53, %v536_v58 }
  0xab   : > { %v467_v34 = vpop.permute.xlu1 %466  ;;  %v383_v36 = vpop.permute.xlu0 %382  ;;  %v636_v1 = vadd.f32 %v620_v46, %v537_v59 }
  0xac   : > { %1523 = vperm.xlu1 %2433, %v1429_v21   ;;  %1518 = vperm.xlu0 %2432, %v1428_v29   ;;  %v516_v17 = vmul.f32 %v2783_v27, %v467_v34  ;;  %v517_v20 = vmul.f32 %v2785_v28, %v467_v34  ;;  %v433_v21 = vmul.f32 %v2790_v30, %v383_v36 }
  0xad   : > { %902 = vmatprep.subr.mxu0 %v720_v25  ;;  %v434_v22 = vmul.f32 %v2792_v31, %v383_v36 }
  0xae   : > { %903 = vmatpush1.msra.mxu0 %v719_v24  ;;  %v532_v48 = vadd.f32 %v516_v17, %v433_v21  ;;  %v725_v21 = vld [vmem:[%s3791_s3 + $0x10] sm:$0xff] }
  0xaf   : > { %v679_v44 = vpop.permute.xlu1 %678  ;;  %v571_v45 = vpop.permute.xlu0 %570  ;;  %v533_v49 = vadd.f32 %v517_v20, %v434_v22  ;;  %v724_v20 = vld [vmem:[%s3791_s3 + $0x8] sm:$0xff]  ;;  %v726_v22 = vld [vmem:[%s3791_s3 + $0x18] sm:$0xff] }
  0xb0   : > { %v701_v50 = vadd.f32 %v679_v44, %v637_v39  ;;  %v702_v51 = vadd.f32 %v679_v44, %v638_v40  ;;  %1533 = vperm.xlu1 %2433, %v1431_v26   ;;  %1528 = vperm.xlu0 %2432, %v1430_v41   ;;  %v617_v9 = vmul.f32 %v2794_v32, %v571_v45  ;;  %v1438_v39 = vld [vmem:[%s3796_s8 + $0xc0] sm:$0xff] }
  0xb1   : > { %v618_v12 = vmul.f32 %v2796_v33, %v571_v45 }
  0xb2   : > { %v717_v54 = vmax.f32 %v701_v50, 0.0  ;;  %v718_v55 = vmax.f32 %v702_v51, 0.0  ;;  %v633_v23 = vadd.f32 %v617_v9, %v534_v14 }
  0xb3   : > { %v462_v57 = vpop.permute.xlu1 %461  ;;  %v378_v47 = vpop.permute.xlu0 %377  ;;  %v634_v29 = vadd.f32 %v618_v12, %v535_v16  ;;  %v1444_v16 = vld [vmem:[%s3796_s8 + $0xf0] sm:$0xff] }
  0xb4   : > { %1543 = vperm.xlu1 %2433, %v1433_v52   ;;  %1538 = vperm.xlu0 %2432, %v1432_v56   ;;  %v514_v24 = vmul.f32 %v2783_v27, %v462_v57  ;;  %v515_v25 = vmul.f32 %v2785_v28, %v462_v57  ;;  %v431_v38 = vmul.f32 %v2790_v30, %v378_v47 }
  0xb5   : > { %904 = vmatprep.subr.mxu0 %v718_v55  ;;  %v432_v34 = vmul.f32 %v2792_v31, %v378_v47 }
  0xb6   : > { %905 = vmatpush1.msra.mxu0 %v717_v54  ;;  %v1440_v54 = vld [vmem:[%s3796_s8 + $0xd0] sm:$0xff]  ;;  %v530_v55 = vadd.f32 %v514_v24, %v431_v38  ;;  %v728_v24 = vld [vmem:[%s3791_s3 + $0x28] sm:$0xff] }
  0xb7   : > { %v674_v5 = vpop.permute.xlu1 %673  ;;  %v566_v8 = vpop.permute.xlu0 %565  ;;  %v531_v56 = vadd.f32 %v515_v25, %v432_v34  ;;  %v729_v25 = vld [vmem:[%s3791_s3 + $0x30] sm:$0xff]  ;;  %v732_v38 = vld [vmem:[%s3791_s3 + $0x48] sm:$0xff] }
  0xb8   : > { %v699_v10 = vadd.f32 %v674_v5, %v635_v63  ;;  %v700_v11 = vadd.f32 %v674_v5, %v636_v1  ;;  %1553 = vperm.xlu1 %2433, %v1435_v60   ;;  %1548 = vperm.xlu0 %2432, %v1434_v2   ;;  %v615_v26 = vmul.f32 %v2794_v32, %v566_v8  ;;  %v733_v34 = vld [vmem:[%s3791_s3 + $0x50] sm:$0xff] }
  0xb9   : > { %v616_v36 = vmul.f32 %v2796_v33, %v566_v8 }
  0xba   : > { %v715_v15 = vmax.f32 %v699_v10, 0.0  ;;  %v716_v6 = vmax.f32 %v700_v11, 0.0  ;;  %v631_v46 = vadd.f32 %v615_v26, %v532_v48  ;;  %v734_v26 = vld [vmem:[%s3791_s3 + $0x58] sm:$0xff] }
  0xbb   : > { %v457_v18 = vpop.permute.xlu1 %456  ;;  %v373_v19 = vpop.permute.xlu0 %372 }
  0xbc   : > { %1563 = vperm.xlu1 %2433, %v1437_v13   ;;  %1558 = vperm.xlu0 %2432, %v1436_v7   ;;  %v512_v40 = vmul.f32 %v2783_v27, %v457_v18  ;;  %v513_v41 = vmul.f32 %v2785_v28, %v457_v18  ;;  %v429_v42 = vmul.f32 %v2790_v30, %v373_v19  ;;  %v1441_v27 = vld [vmem:[%s3796_s8 + $0xd8] sm:$0xff] }
  0xbd   : > { %906 = vmatprep.subr.mxu0 %v716_v6  ;;  %v430_v43 = vmul.f32 %v2792_v31, %v373_v19  ;;  %v632_v31 = vadd.f32 %v616_v36, %v533_v49  ;;  %v723_v19 = vld [vmem:[%s3791_s3] sm:$0xff] }
  0xbe   : > { %907 = vmatpush1.msra.mxu0 %v715_v15  ;;  %v528_v57 = vadd.f32 %v512_v40, %v429_v42  ;;  %v1445_v15 = vld [vmem:[%s3796_s8 + $0xf8] sm:$0xff]  ;;  %v735_v36 = vld [vmem:[%s3791_s3 + $0x60] sm:$0xff]  ;;  %v737_v40 = vld [vmem:[%s3791_s3 + $0x70] sm:$0xff] }
  0xbf   : > { %v669_v44 = vpop.permute.xlu1 %668  ;;  %v561_v45 = vpop.permute.xlu0 %560  ;;  %v529_v47 = vadd.f32 %v513_v41, %v430_v43  ;;  %v738_v41 = vld [vmem:[%s3791_s3 + $0x78] sm:$0xff] }
  0xc0   : > { %v697_v50 = vadd.f32 %v669_v44, %v633_v23  ;;  %v698_v51 = vadd.f32 %v669_v44, %v634_v29  ;;  %1573 = vperm.xlu1 %2433, %v1439_v37   ;;  %v613_v52 = vmul.f32 %v2794_v32, %v561_v45  ;;  %v614_v53 = vmul.f32 %v2796_v33, %v561_v45  ;;  %v727_v23 = vld [vmem:[%s3791_s3 + $0x20] sm:$0xff]  ;;  %v730_v29 = vld [vmem:[%s3791_s3 + $0x38] sm:$0xff] }
  0xc1   : > { %1568 = vperm.xlu0 %2432, %v1438_v39   ;;  %v731_v37 = vld [vmem:[%s3791_s3 + $0x40] sm:$0xff]  ;;  %v736_v39 = vld [vmem:[%s3791_s3 + $0x68] sm:$0xff] }
  0xc2   : > { %v713_v28 = vmax.f32 %v697_v50, 0.0  ;;  %v714_v30 = vmax.f32 %v698_v51, 0.0  ;;  %v629_v1 = vadd.f32 %v613_v52, %v530_v55  ;;  %v630_v2 = vadd.f32 %v614_v53, %v531_v56 }
  0xc3   : > { %v664_v58 = vpop.permute.xlu1 %663  ;;  %v556_v59 = vpop.permute.xlu0 %555 }
  0xc4   : > { %v695_v60 = vadd.f32 %v664_v58, %v631_v46  ;;  %v696_v61 = vadd.f32 %v664_v58, %v632_v31  ;;  %v611_v62 = vmul.f32 %v2794_v32, %v556_v59  ;;  %v612_v63 = vmul.f32 %v2796_v33, %v556_v59  ;;  %1583 = vperm.xlu1 %2433, %v1441_v27   ;;  %v1442_v32 = vld [vmem:[%s3796_s8 + $0xe0] sm:$0xff] }
  0xc5   : > { %1578 = vperm.xlu0 %2432, %v1440_v54   ;;  %908 = vmatprep.subr.mxu0 %v714_v30 }
  0xc6   : > { %v711_v4 = vmax.f32 %v695_v60, 0.0  ;;  %v712_v5 = vmax.f32 %v696_v61, 0.0  ;;  %909 = vmatpush1.msra.mxu0 %v713_v28  ;;  %v627_v8 = vadd.f32 %v611_v62, %v528_v57  ;;  %v628_v9 = vadd.f32 %v612_v63, %v529_v47 }
  0xc7   : > { %v654_v10 = vpop.permute.xlu1 %653  ;;  %v659_v33 = vpop.permute.xlu0 %658 }
  0xc8   : > { %v692_v11 = vadd.f32 %v654_v10, %v628_v9  ;;  %v693_v12 = vadd.f32 %v659_v33, %v629_v1  ;;  %v694_v13 = vadd.f32 %v659_v33, %v630_v2  ;;  %1593 = vperm.xlu1 %2433, %v1443_v3   ;;  %v691_v14 = vadd.f32 %v654_v10, %v627_v8 }
  0xc9   : > { %1588 = vperm.xlu0 %2432, %v1442_v32   ;;  %910 = vmatprep.subr.mxu0 %v712_v5 }
  0xca   : > { %v709_v6 = vmax.f32 %v693_v12, 0.0  ;;  %v710_v7 = vmax.f32 %v694_v13, 0.0  ;;  %911 = vmatpush1.msra.mxu0 %v711_v4  ;;  %v708_v17 = vmax.f32 %v692_v11, 0.0  ;;  %v707_v18 = vmax.f32 %v691_v14, 0.0 }
  0xcb   : > { %v833_v61 = vpop.permute.xlu0 %832  ;;  %v828_v63 = vpop.permute.xlu1 %827 }
  0xcc   : > { %1603 = vperm.xlu1 %2433, %v1445_v15   ;;  %912 = vmatprep.subr.mxu0 %v710_v7 }
  0xcd   : > { %1598 = vperm.xlu0 %2432, %v1444_v16   ;;  %913 = vmatpush1.msra.mxu0 %v709_v6 }
  0xce   : > { %914 = vmatprep.subr.mxu0 %v708_v17 }
  0xcf   : > { %915 = vmatpush1.msra.mxu0 %v707_v18  ;;  %v823_v3 = vpop.permute.xlu0 %822  ;;  %v818_v5 = vpop.permute.xlu1 %817 }
  0xd0   : > { %2334 = vmatmul.mubr.msk.f32.vlgmr.msra.gmra.mxu0 %vm835_vm0, %v723_v19 }
  0xd1   : > { %954 = vmatprep.mubr.f32.mxu0 %v2475_v35 }
  0xd3   : > { %v813_v32 = vpop.permute.xlu0 %812  ;;  %v808_v33 = vpop.permute.xlu1 %807 }
  0xd4   : > { %2335 = vmatmul.mubr.msk.f32.gmra.mxu0 %vm835_vm0, %v724_v20 }
  0xd5   : > { %960 = vmatprep.mubr.f32.mxu0 %v2475_v35 }
  0xd7   : > { %v803_v6 = vpop.permute.xlu0 %802  ;;  %v798_v18 = vpop.permute.xlu1 %797 }
  0xd8   : > { %2336 = vmatmul.mubr.msk.f32.gmra.mxu0 %vm835_vm0, %v725_v21 }
  0xd9   : > { %966 = vmatprep.mubr.f32.mxu0 %v2475_v35 }
  0xdc   : > { %2337 = vmatmul.mubr.msk.f32.gmra.mxu0 %vm835_vm0, %v726_v22 }
  0xdd   : > { %972 = vmatprep.mubr.f32.mxu0 %v2475_v35 }
  0xe0   : > { %2338 = vmatmul.mubr.msk.f32.gmra.mxu0 %vm835_vm0, %v727_v23 }
  0xe1   : > { %978 = vmatprep.mubr.f32.mxu0 %v2475_v35 }
  0xe4   : > { %2339 = vmatmul.mubr.msk.f32.gmra.mxu0 %vm835_vm0, %v728_v24 }
  0xe5   : > { %984 = vmatprep.mubr.f32.mxu0 %v2475_v35 }
  0xe8   : > { %2340 = vmatmul.mubr.msk.f32.gmra.mxu0 %vm835_vm0, %v729_v25 }
  0xe9   : > { %990 = vmatprep.mubr.f32.mxu0 %v2475_v35 }
  0xec   : > { %2341 = vmatmul.mubr.msk.f32.gmra.mxu0 %vm835_vm0, %v730_v29 }
  0xed   : > { %996 = vmatprep.mubr.f32.mxu0 %v2475_v35 }
  0xf0   : > { %2342 = vmatmul.mubr.msk.f32.gmra.mxu0 %vm835_vm0, %v731_v37  ;;  %v793_v37 = vpop.permute.xlu0 %792 }
  0xf1   : > { %1002 = vmatprep.mubr.f32.mxu0 %v2475_v35 }
  0xf4   : > { %2343 = vmatmul.mubr.msk.f32.gmra.mxu0 %vm835_vm0, %v732_v38 }
  0xf5   : > { %1008 = vmatprep.mubr.f32.mxu0 %v2475_v35 }
  0xf8   : > { %2344 = vmatmul.mubr.msk.f32.gmra.mxu0 %vm835_vm0, %v733_v34 }
  0xf9   : > { %1014 = vmatprep.mubr.f32.mxu0 %v2475_v35 }
  0xfc   : > { %2345 = vmatmul.mubr.msk.f32.gmra.mxu0 %vm835_vm0, %v734_v26 }
  0xfd   : > { %1020 = vmatprep.mubr.f32.mxu0 %v2475_v35 }
 0x100   : > { %2346 = vmatmul.mubr.msk.f32.gmra.mxu0 %vm835_vm0, %v735_v36 }
 0x101   : > { %1026 = vmatprep.mubr.f32.mxu0 %v2475_v35 }
 0x104   : > { %2347 = vmatmul.mubr.msk.f32.gmra.mxu0 %vm835_vm0, %v736_v39  ;;  %v788_v39 = vpop.permute.xlu1 %787 }
 0x105   : > { %1032 = vmatprep.mubr.f32.mxu0 %v2475_v35 }
 0x108   : > { %2348 = vmatmul.mubr.msk.f32.gmra.mxu0 %vm835_vm0, %v737_v40 }
 0x109   : > { %1038 = vmatprep.mubr.f32.mxu0 %v2475_v35 }
 0x10c   : > { %2349 = vmatmul.mubr.msk.f32.gmra.mxu0 %vm835_vm0, %v738_v41 }
 0x10d   : > { %1670 = vmatprep.mubr.f32.mxu0 %v2475_v35 }
 0x190   : > { %v3027_v42 = vpop.f32.mrf.mxu0 }
 0x192   : > { %v3029_v43 = vpop.f32.mrf.mxu0 }
 0x194   : > { %v3031_v44 = vpop.f32.mrf.mxu0 }
 0x196   : > { %v3033_v45 = vpop.f32.mrf.mxu0 }
 0x198   : > { %v3035_v48 = vpop.f32.mrf.mxu0 }
 0x19a   : > { %v3037_v49 = vpop.f32.mrf.mxu0 }
 0x19c   : > { %v3039_v50 = vpop.f32.mrf.mxu0 }
 0x19e   : > { %v3041_v51 = vpop.f32.mrf.mxu0 }
 0x1a0   : > { %v3043_v52 = vpop.f32.mrf.mxu0 }
 0x1a2   : > { %v3045_v53 = vpop.f32.mrf.mxu0 }
 0x1a4   : > { %v3047_v27 = vpop.f32.mrf.mxu0 }
 0x1a6   : > { %v3049_v28 = vpop.f32.mrf.mxu0 }
 0x1a8   : > { %v3051_v30 = vpop.f32.mrf.mxu0 }
 0x1aa   : > { %v3053_v46 = vpop.f32.mrf.mxu0 }
 0x1ac   : > { %v3055_v31 = vpop.f32.mrf.mxu0 }
 0x1ae   : > { %v3057_v54 = vpop.f32.mrf.mxu0 }
 0x1b0   : > { %v998_v55 = vpop.f32.mrf.mxu0 }
 0x1b2   : > { %v1000_v56 = vpop.f32.mrf.mxu0 }
 0x1b4   : > { %v1004_v57 = vpop.f32.mrf.mxu0 }
 0x1b6   : > { %v1006_v47 = vpop.f32.mrf.mxu0 }
 0x1b8   : > { %v1010_v58 = vpop.f32.mrf.mxu0 }
 0x1b9   : > { %v1011_v40 = vadd.f32 %v1010_v58, %v808_v33  ;;  %v778_v58 = vpop.permute.xlu1 %777 }
 0x1ba   : > { %v1012_v59 = vpop.f32.mrf.mxu0 }
 0x1bb   : > { %v1013_v26 = vadd.f32 %v1012_v59, %v808_v33  ;;  %v995_v59 = vadd.f32 %v3057_v54, %v793_v37 }
 0x1bc   : > { %v1016_v60 = vpop.f32.mrf.mxu0 }
 0x1bd   : > { %v1017_v38 = vadd.f32 %v1016_v60, %v813_v32  ;;  %v999_v60 = vadd.f32 %v998_v55, %v798_v18  ;;  %v1060_v33 = vmax.f32 %v995_v59, 0.0 }
 0x1be   : > { %v1018_v62 = vpop.f32.mrf.mxu0 }
 0x1bf   : > { %v1019_v25 = vadd.f32 %v1018_v62, %v813_v32  ;;  %v1001_v62 = vadd.f32 %v1000_v56, %v798_v18  ;;  %v987_v56 = vadd.f32 %v3051_v30, %v788_v39 }
 0x1c0   : > { %v1022_v1 = vpop.f32.mrf.mxu0 }
 0x1c1   : > { %v1023_v23 = vadd.f32 %v1022_v1, %v818_v5  ;;  %v1005_v1 = vadd.f32 %v1004_v57, %v803_v6  ;;  %v989_v57 = vadd.f32 %v3053_v46, %v788_v39  ;;  %v1062_v32 = vmax.f32 %v1001_v62, 0.0  ;;  %v768_v46 = vpop.permute.xlu1 %767  ;;  %v1086_v39 = vld [vmem:[%s3793_s5 + $0x48] sm:$0xff] }
 0x1c2   : > { %v1024_v2 = vpop.f32.mrf.mxu0 }
 0x1c3   : > { %v1025_v21 = vadd.f32 %v1024_v2, %v818_v5  ;;  %v1069_v41 = vmax.f32 %v1023_v23, 0.0  ;;  %v1067_v2 = vmax.f32 %v1017_v38, 0.0  ;;  %v1065_v5 = vmax.f32 %v1011_v40, 0.0  ;;  %v1082_v38 = vld [vmem:[%s3793_s5 + $0x28] sm:$0xff]  ;;  %v1087_v40 = vld [vmem:[%s3793_s5 + $0x50] sm:$0xff] }
 0x1c4   : > { %v1028_v4 = vpop.f32.mrf.mxu0 }
 0x1c5   : > { %v1029_v19 = vadd.f32 %v1028_v4, %v823_v3  ;;  %v1070_v36 = vmax.f32 %v1025_v21, 0.0  ;;  %v783_v4 = vpop.permute.xlu0 %782 }
 0x1c6   : > { %v1030_v8 = vpop.f32.mrf.mxu0  ;;  %v983_v55 = vadd.f32 %v3049_v28, %v783_v4 }
 0x1c7   : > { %v1031_v16 = vadd.f32 %v1030_v8, %v823_v3  ;;  %v1071_v34 = vmax.f32 %v1029_v19, 0.0  ;;  %v1066_v3 = vmax.f32 %v1013_v26, 0.0  ;;  %v1084_v26 = vld [vmem:[%s3793_s5 + $0x38] sm:$0xff] }
 0x1c8   : > { %v1034_v9 = vpop.f32.mrf.mxu0 }
 0x1c9   : > { %v1035_v7 = vadd.f32 %v1034_v9, %v828_v63  ;;  %v1072_v29 = vmax.f32 %v1031_v16, 0.0  ;;  %v993_v9 = vadd.f32 %v3055_v31, %v793_v37  ;;  %v773_v54 = vpop.permute.xlu0 %772  ;;  %v977_v31 = vadd.f32 %v3045_v53, %v778_v58  ;;  %v1081_v37 = vld [vmem:[%s3793_s5 + $0x20] sm:$0xff] }
 0x1ca   : > { %v1036_v10 = vpop.f32.mrf.mxu0  ;;  %v971_v30 = vadd.f32 %v3041_v51, %v773_v54  ;;  %v969_v28 = vadd.f32 %v3039_v50, %v773_v54  ;;  %v758_v51 = vpop.permute.xlu1 %757 }
 0x1cb   : > { %v1037_v14 = vadd.f32 %v1036_v10, %v828_v63  ;;  %v1073_v24 = vmax.f32 %v1035_v7, 0.0  ;;  %v1068_v63 = vmax.f32 %v1019_v25, 0.0  ;;  %v1061_v10 = vmax.f32 %v999_v60, 0.0 }
 0x1cc   : > { %v1040_v11 = vpop.f32.mrf.mxu0  ;;  %v1054_v16 = vmax.f32 %v977_v31, 0.0  ;;  %v1052_v19 = vmax.f32 %v971_v30, 0.0  ;;  %v1051_v21 = vmax.f32 %v969_v28, 0.0  ;;  %v953_v50 = vadd.f32 %v3029_v43, %v758_v51  ;;  %v1079_v43 = vld [vmem:[%s3793_s5 + $0x10] sm:$0xff] }
 0x1cd   : > { %v1041_v12 = vadd.f32 %v1040_v11, %v833_v61  ;;  %v1074_v22 = vmax.f32 %v1037_v14, 0.0  ;;  %v981_v11 = vadd.f32 %v3047_v27, %v783_v4  ;;  %v975_v14 = vadd.f32 %v3043_v52, %v778_v58  ;;  %v763_v53 = vpop.permute.xlu0 %762 }
 0x1ce   : > { %v1042_v13 = vpop.f32.mrf.mxu0  ;;  %v965_v27 = vadd.f32 %v3037_v49, %v768_v46  ;;  %v959_v52 = vadd.f32 %v3033_v45, %v763_v53  ;;  %v951_v49 = vadd.f32 %v3027_v42, %v758_v51  ;;  %v1046_v45 = vmax.f32 %v953_v50, 0.0  ;;  %v1078_v42 = vld [vmem:[%s3793_s5 + $0x8] sm:$0xff] }
 0x1cf   : > { %v1043_v15 = vadd.f32 %v1042_v13, %v833_v61  ;;  %v1075_v20 = vmax.f32 %v1041_v12, 0.0  ;;  %v1007_v61 = vadd.f32 %v1006_v47, %v803_v6  ;;  %v1063_v47 = vmax.f32 %v1005_v1, 0.0  ;;  %v1091_v1 = vld [vmem:[%s3793_s5 + $0x70] sm:$0xff] }
 0x1d0   : > { %v1059_v12 = vmax.f32 %v993_v9, 0.0  ;;  %v1058_v13 = vmax.f32 %v989_v57, 0.0  ;;  %v1056_v6 = vmax.f32 %v983_v55, 0.0  ;;  %v1055_v7 = vmax.f32 %v981_v11, 0.0 }
 0x1d1   : > { %v1076_v17 = vmax.f32 %v1043_v15, 0.0  ;;  %v1064_v8 = vmax.f32 %v1007_v61, 0.0  ;;  %v1057_v15 = vmax.f32 %v987_v56, 0.0  ;;  %v1053_v18 = vmax.f32 %v975_v14, 0.0  ;;  %v1089_v61 = vld [vmem:[%s3793_s5 + $0x60] sm:$0xff] }
 0x1d2   : > { %v1045_v25 = vmax.f32 %v951_v49, 0.0 }
 0x1d3   : > { %1189 = vmatprep.subr.mxu1 %v1076_v17  ;;  %v963_v17 = vadd.f32 %v3035_v48, %v768_v46  ;;  %v1048_v48 = vmax.f32 %v959_v52, 0.0 }
 0x1d4   : > { %1190 = vmatpush1.msra.mxu1 %v1075_v20  ;;  %v957_v20 = vadd.f32 %v3031_v44, %v763_v53  ;;  %v1077_v44 = vld [vmem:[%s3793_s5] sm:$0xff] }
 0x1d5   : > { %1191 = vmatprep.subr.mxu1 %v1074_v22  ;;  %v1050_v22 = vmax.f32 %v965_v27, 0.0  ;;  %v1049_v23 = vmax.f32 %v963_v17, 0.0 }
 0x1d6   : > { %1192 = vmatpush1.msra.mxu1 %v1073_v24  ;;  %v1047_v24 = vmax.f32 %v957_v20, 0.0 }
 0x1d7   : > { %1193 = vmatprep.subr.mxu1 %v1072_v29  ;;  %v1080_v29 = vld [vmem:[%s3793_s5 + $0x18] sm:$0xff] }
 0x1d8   : > { %1194 = vmatpush1.msra.mxu1 %v1071_v34  ;;  %v1083_v34 = vld [vmem:[%s3793_s5 + $0x30] sm:$0xff] }
 0x1d9   : > { %1195 = vmatprep.subr.mxu1 %v1070_v36  ;;  %v1085_v36 = vld [vmem:[%s3793_s5 + $0x40] sm:$0xff] }
 0x1da   : > { %1196 = vmatpush1.msra.mxu1 %v1069_v41  ;;  %v1088_v41 = vld [vmem:[%s3793_s5 + $0x58] sm:$0xff] }
 0x1db   : > { %1197 = vmatprep.subr.mxu1 %v1068_v63  ;;  %v1090_v63 = vld [vmem:[%s3793_s5 + $0x68] sm:$0xff] }
 0x1dc   : > { %1198 = vmatpush1.msra.mxu1 %v1067_v2  ;;  %v1092_v2 = vld [vmem:[%s3793_s5 + $0x78] sm:$0xff] }
 0x1dd   : > { %1199 = vmatprep.subr.mxu1 %v1066_v3 }
 0x1de   : > { %1200 = vmatpush1.msra.mxu1 %v1065_v5 }
 0x1df   : > { %1201 = vmatprep.subr.mxu1 %v1064_v8 }
 0x1e0   : > { %1202 = vmatpush1.msra.mxu1 %v1063_v47 }
 0x1e1   : > { %1203 = vmatprep.subr.mxu1 %v1062_v32 }
 0x1e2   : > { %1204 = vmatpush1.msra.mxu1 %v1061_v10 }
 0x1e3   : > { %1205 = vmatprep.subr.mxu1 %v1060_v33 }
 0x1e4   : > { %1206 = vmatpush1.msra.mxu1 %v1059_v12 }
 0x1e5   : > { %1207 = vmatprep.subr.mxu1 %v1058_v13 }
 0x1e6   : > { %1208 = vmatpush1.msra.mxu1 %v1057_v15  ;;  %v1187_v15 = vpop.permute.xlu0 %1186 }
 0x1e7   : > { %1209 = vmatprep.subr.mxu1 %v1056_v6  ;;  %v1182_v6 = vpop.permute.xlu1 %1181 }
 0x1e8   : > { %1210 = vmatpush1.msra.mxu1 %v1055_v7 }
 0x1e9   : > { %1211 = vmatprep.subr.mxu1 %v1054_v16 }
 0x1ea   : > { %1212 = vmatpush1.msra.mxu1 %v1053_v18  ;;  %v1177_v27 = vpop.permute.xlu0 %1176 }
 0x1eb   : > { %1213 = vmatprep.subr.mxu1 %v1052_v19  ;;  %v1172_v53 = vpop.permute.xlu1 %1171 }
 0x1ec   : > { %1214 = vmatpush1.msra.mxu1 %v1051_v21 }
 0x1ed   : > { %1215 = vmatprep.subr.mxu1 %v1050_v22 }
 0x1ee   : > { %1216 = vmatpush1.msra.mxu1 %v1049_v23  ;;  %v1167_v52 = vpop.permute.xlu0 %1166 }
 0x1ef   : > { %1217 = vmatprep.subr.mxu1 %v1048_v48  ;;  %v1162_v51 = vpop.permute.xlu1 %1161 }
 0x1f0   : > { %1218 = vmatpush1.msra.mxu1 %v1047_v24 }
 0x1f1   : > { %1219 = vmatprep.subr.mxu1 %v1046_v45 }
 0x1f2   : > { %1220 = vmatpush1.msra.mxu1 %v1045_v25  ;;  %v1157_v23 = vpop.permute.xlu0 %1156 }
 0x1f3   : > { %1254 = vmatmul.mubr.f32.vlgmr.msra.gmra.mxu1 %v1077_v44  ;;  %v1152_v25 = vpop.permute.xlu1 %1151 }
 0x1f4   : > { %1259 = vmatprep.mubr.f32.mxu1 %v2475_v35 }
 0x1f7   : > { %1260 = vmatmul.mubr.f32.gmra.mxu1 %v1078_v42 }
 0x1f8   : > { %1265 = vmatprep.mubr.f32.mxu1 %v2475_v35 }
 0x1fb   : > { %1266 = vmatmul.mubr.f32.gmra.mxu1 %v1079_v43 }
 0x1fc   : > { %1271 = vmatprep.mubr.f32.mxu1 %v2475_v35 }
 0x1ff   : > { %1272 = vmatmul.mubr.f32.gmra.mxu1 %v1080_v29 }
 0x200   : > { %1277 = vmatprep.mubr.f32.mxu1 %v2475_v35 }
 0x203   : > { %1278 = vmatmul.mubr.f32.gmra.mxu1 %v1081_v37 }
 0x204   : > { %1283 = vmatprep.mubr.f32.mxu1 %v2475_v35 }
 0x207   : > { %1284 = vmatmul.mubr.f32.gmra.mxu1 %v1082_v38 }
 0x208   : > { %1289 = vmatprep.mubr.f32.mxu1 %v2475_v35 }
 0x20b   : > { %1290 = vmatmul.mubr.f32.gmra.mxu1 %v1083_v34 }
 0x20c   : > { %1295 = vmatprep.mubr.f32.mxu1 %v2475_v35 }
 0x20f   : > { %1296 = vmatmul.mubr.f32.gmra.mxu1 %v1084_v26 }
 0x210   : > { %1301 = vmatprep.mubr.f32.mxu1 %v2475_v35 }
 0x213   : > { %1302 = vmatmul.mubr.f32.gmra.mxu1 %v1085_v36  ;;  %v1147_v36 = vpop.permute.xlu0 %1146 }
 0x214   : > { %1307 = vmatprep.mubr.f32.mxu1 %v2475_v35 }
 0x217   : > { %1308 = vmatmul.mubr.f32.gmra.mxu1 %v1086_v39 }
 0x218   : > { %1313 = vmatprep.mubr.f32.mxu1 %v2475_v35 }
 0x21b   : > { %1314 = vmatmul.mubr.f32.gmra.mxu1 %v1087_v40 }
 0x21c   : > { %1319 = vmatprep.mubr.f32.mxu1 %v2475_v35 }
 0x21f   : > { %1320 = vmatmul.mubr.f32.gmra.mxu1 %v1088_v41 }
 0x220   : > { %1325 = vmatprep.mubr.f32.mxu1 %v2475_v35 }
 0x223   : > { %1326 = vmatmul.mubr.f32.gmra.mxu1 %v1089_v61 }
 0x224   : > { %1331 = vmatprep.mubr.f32.mxu1 %v2475_v35 }
 0x227   : > { %1332 = vmatmul.mubr.f32.gmra.mxu1 %v1090_v63  ;;  %v1142_v63 = vpop.permute.xlu1 %1141 }
 0x228   : > { %1337 = vmatprep.mubr.f32.mxu1 %v2475_v35 }
 0x22b   : > { %1338 = vmatmul.mubr.f32.gmra.mxu1 %v1091_v1 }
 0x22c   : > { %1343 = vmatprep.mubr.f32.mxu1 %v2475_v35 }
 0x22f   : > { %1344 = vmatmul.mubr.f32.gmra.mxu1 %v1092_v2 }
 0x230   : > { %1778 = vmatprep.mubr.f32.mxu1 %v2475_v35 }
 0x2b3   : > { %v3139_v62 = vpop.f32.mrf.mxu1 }
 0x2b5   : > { %v3141_v3 = vpop.f32.mrf.mxu1 }
 0x2b7   : > { %v3143_v4 = vpop.f32.mrf.mxu1 }
 0x2b9   : > { %v3145_v60 = vpop.f32.mrf.mxu1 }
 0x2bb   : > { %v3147_v5 = vpop.f32.mrf.mxu1 }
 0x2bd   : > { %v3149_v59 = vpop.f32.mrf.mxu1 }
 0x2bf   : > { %v3151_v8 = vpop.f32.mrf.mxu1 }
 0x2c1   : > { %v3153_v58 = vpop.f32.mrf.mxu1 }
 0x2c3   : > { %v3155_v9 = vpop.f32.mrf.mxu1 }
 0x2c5   : > { %v3157_v47 = vpop.f32.mrf.mxu1 }
 0x2c7   : > { %v3159_v57 = vpop.f32.mrf.mxu1 }
 0x2c9   : > { %v3161_v32 = vpop.f32.mrf.mxu1 }
 0x2cb   : > { %v3163_v56 = vpop.f32.mrf.mxu1 }
 0x2cd   : > { %v3165_v10 = vpop.f32.mrf.mxu1 }
 0x2cf   : > { %v3167_v55 = vpop.f32.mrf.mxu1 }
 0x2d1   : > { %v3169_v33 = vpop.f32.mrf.mxu1 }
 0x2d3   : > { %v3171_v54 = vpop.f32.mrf.mxu1 }
 0x2d5   : > { %v3173_v11 = vpop.f32.mrf.mxu1 }
 0x2d7   : > { %v1309_v12 = vpop.f32.mrf.mxu1 }
 0x2d9   : > { %v1311_v31 = vpop.f32.mrf.mxu1 }
 0x2db   : > { %v1315_v13 = vpop.f32.mrf.mxu1 }
 0x2dc   : > { %v1316_v1 = vadd.f32 %v1315_v13, %v1162_v51 }
 0x2dd   : > { %v1317_v46 = vpop.f32.mrf.mxu1 }
 0x2de   : > { %v1318_v41 = vadd.f32 %v1317_v46, %v1162_v51  ;;  %v1137_v46 = vpop.permute.xlu0 %1136  ;;  %v1370_v13 = vmax.f32 %v1316_v1, 0.0  ;;  %v1387_v1 = vld [vmem:[%s3795_s7 + $0x28] sm:$0xff] }
 0x2df   : > { %v1321_v14 = vpop.f32.mrf.mxu1 }
 0x2e0   : > { %v1322_v39 = vadd.f32 %v1321_v14, %v1167_v52  ;;  %v1306_v14 = vadd.f32 %v3173_v11, %v1152_v25  ;;  %v1294_v11 = vadd.f32 %v3165_v10, %v1142_v63 }
 0x2e1   : > { %v1323_v30 = vpop.f32.mrf.mxu1 }
 0x2e2   : > { %v1324_v34 = vadd.f32 %v1323_v30, %v1167_v52  ;;  %v1310_v30 = vadd.f32 %v1309_v12, %v1157_v23  ;;  %v1132_v12 = vpop.permute.xlu1 %1131  ;;  %v1127_v51 = vpop.permute.xlu0 %1126 }
 0x2e3   : > { %v1327_v28 = vpop.f32.mrf.mxu1  ;;  %v1282_v10 = vadd.f32 %v3157_v47, %v1132_v12 }
 0x2e4   : > { %v1328_v37 = vadd.f32 %v1327_v28, %v1172_v53  ;;  %v1372_v28 = vmax.f32 %v1322_v39, 0.0  ;;  %v1402_v39 = vld [vmem:[%s3795_s7 + $0xa0] sm:$0xff] }
 0x2e5   : > { %v1329_v7 = vpop.f32.mrf.mxu1 }
 0x2e6   : > { %v1330_v43 = vadd.f32 %v1329_v7, %v1172_v53  ;;  %v1374_v2 = vmax.f32 %v1328_v37, 0.0  ;;  %v1371_v7 = vmax.f32 %v1318_v41, 0.0  ;;  %v1298_v53 = vadd.f32 %v3167_v55, %v1147_v36  ;;  %v1403_v41 = vld [vmem:[%s3795_s7 + $0xa8] sm:$0xff] }
 0x2e7   : > { %v1333_v16 = vpop.f32.mrf.mxu1  ;;  %v1286_v55 = vadd.f32 %v3159_v57, %v1137_v46  ;;  %v1274_v57 = vadd.f32 %v3151_v8, %v1127_v51 }
 0x2e8   : > { %v1334_v44 = vadd.f32 %v1333_v16, %v1177_v27  ;;  %v1375_v61 = vmax.f32 %v1330_v43, 0.0 }
 0x2e9   : > { %v1335_v17 = vpop.f32.mrf.mxu1 }
 0x2ea   : > { %v1336_v24 = vadd.f32 %v1335_v17, %v1177_v27  ;;  %v1376_v40 = vmax.f32 %v1334_v44, 0.0  ;;  %v1304_v27 = vadd.f32 %v3171_v54, %v1152_v25  ;;  %v1368_v17 = vmax.f32 %v1310_v30, 0.0  ;;  %v1389_v30 = vld [vmem:[%s3795_s7 + $0x38] sm:$0xff] }
 0x2eb   : > { %v1339_v18 = vpop.f32.mrf.mxu1  ;;  %v1292_v54 = vadd.f32 %v3163_v56, %v1142_v63  ;;  %v1122_v56 = vpop.permute.xlu1 %1121  ;;  %v1404_v63 = vld [vmem:[%s3795_s7 + $0xb0] sm:$0xff] }
 0x2ec   : > { %v1340_v48 = vadd.f32 %v1339_v18, %v1182_v6  ;;  %v1377_v26 = vmax.f32 %v1336_v24, 0.0  ;;  %v1367_v18 = vmax.f32 %v1306_v14, 0.0  ;;  %v1366_v52 = vmax.f32 %v1304_v27, 0.0  ;;  %v1117_v24 = vpop.permute.xlu0 %1116  ;;  %v1390_v14 = vld [vmem:[%s3795_s7 + $0x40] sm:$0xff]  ;;  %v1409_v27 = vld [vmem:[%s3795_s7 + $0xd8] sm:$0xff] }
 0x2ed   : > { %v1341_v19 = vpop.f32.mrf.mxu1  ;;  %v1270_v47 = vadd.f32 %v3149_v59, %v1122_v56  ;;  %v1262_v44 = vadd.f32 %v3143_v4, %v1117_v24 }
 0x2ee   : > { %v1342_v22 = vadd.f32 %v1341_v19, %v1182_v6  ;;  %v1378_v38 = vmax.f32 %v1340_v48, 0.0  ;;  %v1373_v6 = vmax.f32 %v1324_v34, 0.0  ;;  %v1359_v48 = vmax.f32 %v1282_v10, 0.0  ;;  %v1383_v34 = vld [vmem:[%s3795_s7 + $0x8] sm:$0xff] }
 0x2ef   : > { %v1345_v20 = vpop.f32.mrf.mxu1  ;;  %v1112_v8 = vpop.permute.xlu1 %1111  ;;  %v1355_v43 = vmax.f32 %v1270_v47, 0.0  ;;  %v1352_v37 = vmax.f32 %v1262_v44, 0.0 }
 0x2f0   : > { %v1346_v21 = vadd.f32 %v1345_v20, %v1187_v15  ;;  %v1379_v29 = vmax.f32 %v1342_v22, 0.0  ;;  %v1364_v20 = vmax.f32 %v1298_v53, 0.0  ;;  %v1362_v22 = vmax.f32 %v1292_v54, 0.0  ;;  %v1394_v53 = vld [vmem:[%s3795_s7 + $0x60] sm:$0xff]  ;;  %v1396_v54 = vld [vmem:[%s3795_s7 + $0x70] sm:$0xff] }
 0x2f1   : > { %v1347_v50 = vpop.f32.mrf.mxu1  ;;  %v1258_v59 = vadd.f32 %v3141_v3, %v1112_v8  ;;  %v1382_v3 = vld [vmem:[%s3795_s7] sm:$0xff] }
 0x2f2   : > { %v1348_v49 = vadd.f32 %v1347_v50, %v1187_v15  ;;  %v1380_v42 = vmax.f32 %v1346_v21, 0.0  ;;  %v1312_v15 = vadd.f32 %v1311_v31, %v1157_v23  ;;  %v1300_v31 = vadd.f32 %v3169_v33, %v1147_v36  ;;  %v1384_v36 = vld [vmem:[%s3795_s7 + $0x10] sm:$0xff] }
 0x2f3   : > { %v1288_v33 = vadd.f32 %v3161_v32, %v1137_v46  ;;  %v1363_v21 = vmax.f32 %v1294_v11, 0.0  ;;  %v1280_v50 = vadd.f32 %v3155_v9, %v1132_v12  ;;  %v1276_v32 = vadd.f32 %v3153_v58, %v1127_v51  ;;  %v1391_v46 = vld [vmem:[%s3795_s7 + $0x48] sm:$0xff]  ;;  %v1449_v51 = vpop.permute.xlu0 %1448 }
 0x2f4   : > { %v1381_v45 = vmax.f32 %v1348_v49, 0.0  ;;  %v1369_v16 = vmax.f32 %v1312_v15, 0.0  ;;  %v1365_v19 = vmax.f32 %v1300_v31, 0.0  ;;  %v1360_v23 = vmax.f32 %v1286_v55, 0.0  ;;  %v1388_v15 = vld [vmem:[%s3795_s7 + $0x30] sm:$0xff]  ;;  %v1410_v31 = vld [vmem:[%s3795_s7 + $0xe0] sm:$0xff]  ;;  %v1454_v55 = vpop.permute.xlu1 %1453 }
 0x2f5   : > { %v1361_v49 = vmax.f32 %v1288_v33, 0.0  ;;  %v1268_v9 = vadd.f32 %v3147_v5, %v1122_v56  ;;  %v1264_v58 = vadd.f32 %v3145_v60, %v1117_v24  ;;  %v1357_v25 = vmax.f32 %v1276_v32, 0.0  ;;  %v1411_v12 = vld [vmem:[%s3795_s7 + $0xe8] sm:$0xff]  ;;  %v1398_v33 = vld [vmem:[%s3795_s7 + $0x80] sm:$0xff] }
 0x2f6   : > { %1606 = vmatprep.subr.mxu0 %v1381_v45  ;;  %2356 = vmatprep.subr.mxu1 %v1381_v45  ;;  %v1358_v45 = vmax.f32 %v1280_v50, 0.0  ;;  %v1256_v5 = vadd.f32 %v3139_v62, %v1112_v8  ;;  %v1351_v4 = vmax.f32 %v1258_v59, 0.0  ;;  %v1400_v62 = vld [vmem:[%s3795_s7 + $0x90] sm:$0xff]  ;;  %v1395_v11 = vld [vmem:[%s3795_s7 + $0x68] sm:$0xff]  ;;  %v1864_v24 = vand.u32 127, %v411_v0 }
 0x2f7   : > { %1607 = vmatpush1.msra.mxu0 %v1380_v42  ;;  %2372 = vmatpush1.msra.mxu1 %v1380_v42  ;;  %v1356_v42 = vmax.f32 %v1274_v57, 0.0  ;;  %v1353_v60 = vmax.f32 %v1264_v58, 0.0  ;;  %v1867_v58 = vstv %s2350_s20 }
 0x2f8   : > { %1608 = vmatprep.subr.mxu0 %v1379_v29  ;;  %2357 = vmatprep.subr.mxu1 %v1379_v29  ;;  %v1354_v29 = vmax.f32 %v1268_v9, 0.0  ;;  %v3319_v10 = vpop.permute.xlu1 %1463  ;;  %v3349_v8 = vadd.s32 %v1867_v58, %v1864_v24 }
 0x2f9   : > { %1609 = vmatpush1.msra.mxu0 %v1378_v38  ;;  %2373 = vmatpush1.msra.mxu1 %v1378_v38  ;;  %v1350_v38 = vmax.f32 %v1256_v5, 0.0 }
 0x2fa   : > { %1610 = vmatprep.subr.mxu0 %v1377_v26  ;;  %2358 = vmatprep.subr.mxu1 %v1377_v26  ;;  %v1401_v26 = vld [vmem:[%s3795_s7 + $0x98] sm:$0xff]  ;;  %vm1870_vm1 = vcmp.lt.s32.totalorder %v3349_v8, 700 }
 0x2fb   : > { %1611 = vmatpush1.msra.mxu0 %v1376_v40  ;;  %2374 = vmatpush1.msra.mxu1 %v1376_v40  ;;  %v1385_v40 = vld [vmem:[%s3795_s7 + $0x18] sm:$0xff] }
 0x2fc   : > { %1612 = vmatprep.subr.mxu0 %v1375_v61  ;;  %2359 = vmatprep.subr.mxu1 %v1375_v61  ;;  %v1386_v61 = vld [vmem:[%s3795_s7 + $0x20] sm:$0xff]  ;;  %v3323_v56 = vpop.permute.xlu1 %1473 }
 0x2fd   : > { %1613 = vmatpush1.msra.mxu0 %v1374_v2  ;;  %2375 = vmatpush1.msra.mxu1 %v1374_v2  ;;  %v1405_v2 = vld [vmem:[%s3795_s7 + $0xb8] sm:$0xff] }
 0x2fe   : > { %1614 = vmatprep.subr.mxu0 %v1373_v6  ;;  %2360 = vmatprep.subr.mxu1 %v1373_v6  ;;  %v1406_v6 = vld [vmem:[%s3795_s7 + $0xc0] sm:$0xff] }
 0x2ff   : > { %1615 = vmatpush1.msra.mxu0 %v1372_v28  ;;  %2376 = vmatpush1.msra.mxu1 %v1372_v28  ;;  %v1407_v28 = vld [vmem:[%s3795_s7 + $0xc8] sm:$0xff] }
 0x300   : > { %1616 = vmatprep.subr.mxu0 %v1371_v7  ;;  %2361 = vmatprep.subr.mxu1 %v1371_v7  ;;  %v1408_v7 = vld [vmem:[%s3795_s7 + $0xd0] sm:$0xff] }
 0x301   : > { %1617 = vmatpush1.msra.mxu0 %v1370_v13  ;;  %2377 = vmatpush1.msra.mxu1 %v1370_v13  ;;  %v1392_v13 = vld [vmem:[%s3795_s7 + $0x50] sm:$0xff] }
 0x302   : > { %1618 = vmatprep.subr.mxu0 %v1369_v16  ;;  %2362 = vmatprep.subr.mxu1 %v1369_v16  ;;  %v1393_v16 = vld [vmem:[%s3795_s7 + $0x58] sm:$0xff] }
 0x303   : > { %1619 = vmatpush1.msra.mxu0 %v1368_v17  ;;  %2378 = vmatpush1.msra.mxu1 %v1368_v17  ;;  %v1412_v17 = vld [vmem:[%s3795_s7 + $0xf0] sm:$0xff] }
 0x304   : > { %1620 = vmatprep.subr.mxu0 %v1367_v18  ;;  %2363 = vmatprep.subr.mxu1 %v1367_v18  ;;  %v1413_v18 = vld [vmem:[%s3795_s7 + $0xf8] sm:$0xff] }
 0x305   : > { %1621 = vmatpush1.msra.mxu0 %v1366_v52  ;;  %2379 = vmatpush1.msra.mxu1 %v1366_v52  ;;  %v1397_v52 = vld [vmem:[%s3795_s7 + $0x78] sm:$0xff] }
 0x306   : > { %1622 = vmatprep.subr.mxu0 %v1365_v19  ;;  %2364 = vmatprep.subr.mxu1 %v1365_v19  ;;  %v1399_v19 = vld [vmem:[%s3795_s7 + $0x88] sm:$0xff] }
 0x307   : > { %1623 = vmatpush1.msra.mxu0 %v1364_v20  ;;  %2380 = vmatpush1.msra.mxu1 %v1364_v20  ;;  %v1459_v20 = vpop.permute.xlu0 %1458 }
 0x308   : > { %1624 = vmatprep.subr.mxu0 %v1363_v21  ;;  %2365 = vmatprep.subr.mxu1 %v1363_v21 }
 0x309   : > { %1625 = vmatpush1.msra.mxu0 %v1362_v22  ;;  %2381 = vmatpush1.msra.mxu1 %v1362_v22  ;;  %v3327_v22 = vpop.permute.xlu1 %1483 }
 0x30a   : > { %1626 = vmatprep.subr.mxu0 %v1361_v49  ;;  %2366 = vmatprep.subr.mxu1 %v1361_v49 }
 0x30b   : > { %1627 = vmatpush1.msra.mxu0 %v1360_v23  ;;  %2382 = vmatpush1.msra.mxu1 %v1360_v23  ;;  %v3321_v21 = vpop.permute.xlu0 %1468 }
 0x30c   : > { %1628 = vmatprep.subr.mxu0 %v1359_v48  ;;  %2367 = vmatprep.subr.mxu1 %v1359_v48 }
 0x30d   : > { %1629 = vmatpush1.msra.mxu0 %v1358_v45  ;;  %2383 = vmatpush1.msra.mxu1 %v1358_v45  ;;  %v3331_v32 = vpop.permute.xlu1 %1493 }
 0x30e   : > { %1630 = vmatprep.subr.mxu0 %v1357_v25  ;;  %2368 = vmatprep.subr.mxu1 %v1357_v25  ;;  %v1865_v25 = vadd.s32 128, %v1864_v24 }
 0x30f   : > { %1631 = vmatpush1.msra.mxu0 %v1356_v42  ;;  %2384 = vmatpush1.msra.mxu1 %v1356_v42  ;;  %v3325_v50 = vpop.permute.xlu0 %1478 }
 0x310   : > { %1632 = vmatprep.subr.mxu0 %v1355_v43  ;;  %2369 = vmatprep.subr.mxu1 %v1355_v43  ;;  %v3353_v42 = vadd.s32 %v1867_v58, %v1865_v25 }
 0x311   : > { %1633 = vmatpush1.msra.mxu0 %v1354_v29  ;;  %2385 = vmatpush1.msra.mxu1 %v1354_v29  ;;  %v3335_v57 = vpop.permute.xlu1 %1503 }
 0x312   : > { %1634 = vmatprep.subr.mxu0 %v1353_v60  ;;  %2370 = vmatprep.subr.mxu1 %v1353_v60  ;;  %vm1871_vm2 = vcmp.lt.s32.totalorder %v3353_v42, 700 }
 0x313   : > { %1635 = vmatpush1.msra.mxu0 %v1352_v37  ;;  %2386 = vmatpush1.msra.mxu1 %v1352_v37 }
 0x314   : > { %1636 = vmatprep.subr.mxu0 %v1351_v4  ;;  %2371 = vmatprep.subr.mxu1 %v1351_v4 }
 0x315   : > { %1637 = vmatpush1.msra.mxu0 %v1350_v38  ;;  %2387 = vmatpush1.msra.mxu1 %v1350_v38  ;;  %v3339_v47 = vpop.permute.xlu1 %1513 }
 0x316   : > { %1671 = vmatmul.mubr.f32.vlgmr.msra.gmra.mxu0 %v1382_v3  ;;  %1779 = vmatmul.mubr.f32.vlgmr.msra.gmra.mxu1 %v1400_v62 }
 0x317   : > { %1676 = vmatprep.mubr.f32.mxu0 %v2475_v35  ;;  %1784 = vmatprep.mubr.f32.mxu1 %v2475_v35 }
 0x319   : > { %v3345_v9 = vpop.permute.xlu1 %1523 }
 0x31a   : > { %1677 = vmatmul.mubr.f32.gmra.mxu0 %v1383_v34  ;;  %1785 = vmatmul.mubr.f32.gmra.mxu1 %v1401_v26 }
 0x31b   : > { %1682 = vmatprep.mubr.f32.mxu0 %v2475_v35  ;;  %1790 = vmatprep.mubr.f32.mxu1 %v2475_v35 }
 0x31d   : > { %v3351_v44 = vpop.permute.xlu1 %1533 }
 0x31e   : > { %1683 = vmatmul.mubr.f32.gmra.mxu0 %v1384_v36  ;;  %1791 = vmatmul.mubr.f32.gmra.mxu1 %v1402_v39 }
 0x31f   : > { %1688 = vmatprep.mubr.f32.mxu0 %v2475_v35  ;;  %1796 = vmatprep.mubr.f32.mxu1 %v2475_v35 }
 0x321   : > { %v1544_v4 = vpop.permute.xlu1 %1543 }
 0x322   : > { %1689 = vmatmul.mubr.f32.gmra.mxu0 %v1385_v40  ;;  %1797 = vmatmul.mubr.f32.gmra.mxu1 %v1403_v41 }
 0x323   : > { %1694 = vmatprep.mubr.f32.mxu0 %v2475_v35  ;;  %1802 = vmatprep.mubr.f32.mxu1 %v2475_v35 }
 0x326   : > { %1695 = vmatmul.mubr.f32.gmra.mxu0 %v1386_v61  ;;  %1803 = vmatmul.mubr.f32.gmra.mxu1 %v1404_v63 }
 0x327   : > { %1700 = vmatprep.mubr.f32.mxu0 %v2475_v35  ;;  %1808 = vmatprep.mubr.f32.mxu1 %v2475_v35 }
 0x32a   : > { %1701 = vmatmul.mubr.f32.gmra.mxu0 %v1387_v1  ;;  %1809 = vmatmul.mubr.f32.gmra.mxu1 %v1405_v2 }
 0x32b   : > { %1706 = vmatprep.mubr.f32.mxu0 %v2475_v35  ;;  %1814 = vmatprep.mubr.f32.mxu1 %v2475_v35 }
 0x32e   : > { %1707 = vmatmul.mubr.f32.gmra.mxu0 %v1388_v15  ;;  %1815 = vmatmul.mubr.f32.gmra.mxu1 %v1406_v6 }
 0x32f   : > { %1712 = vmatprep.mubr.f32.mxu0 %v2475_v35  ;;  %1820 = vmatprep.mubr.f32.mxu1 %v2475_v35 }
 0x332   : > { %1713 = vmatmul.mubr.f32.gmra.mxu0 %v1389_v30  ;;  %1821 = vmatmul.mubr.f32.gmra.mxu1 %v1407_v28 }
 0x333   : > { %1718 = vmatprep.mubr.f32.mxu0 %v2475_v35  ;;  %1826 = vmatprep.mubr.f32.mxu1 %v2475_v35 }
 0x336   : > { %1719 = vmatmul.mubr.f32.gmra.mxu0 %v1390_v14  ;;  %1827 = vmatmul.mubr.f32.gmra.mxu1 %v1408_v7 }
 0x337   : > { %1724 = vmatprep.mubr.f32.mxu0 %v2475_v35  ;;  %1832 = vmatprep.mubr.f32.mxu1 %v2475_v35 }
 0x33a   : > { %1725 = vmatmul.mubr.f32.gmra.mxu0 %v1391_v46  ;;  %1833 = vmatmul.mubr.f32.gmra.mxu1 %v1409_v27 }
 0x33b   : > { %1730 = vmatprep.mubr.f32.mxu0 %v2475_v35  ;;  %1838 = vmatprep.mubr.f32.mxu1 %v2475_v35 }
 0x33e   : > { %1731 = vmatmul.mubr.f32.gmra.mxu0 %v1392_v13  ;;  %1839 = vmatmul.mubr.f32.gmra.mxu1 %v1410_v31 }
 0x33f   : > { %1736 = vmatprep.mubr.f32.mxu0 %v2475_v35  ;;  %1844 = vmatprep.mubr.f32.mxu1 %v2475_v35 }
 0x342   : > { %1737 = vmatmul.mubr.f32.gmra.mxu0 %v1393_v16  ;;  %1845 = vmatmul.mubr.f32.gmra.mxu1 %v1411_v12 }
 0x343   : > { %1742 = vmatprep.mubr.f32.mxu0 %v2475_v35  ;;  %1850 = vmatprep.mubr.f32.mxu1 %v2475_v35 }
 0x346   : > { %1743 = vmatmul.mubr.f32.gmra.mxu0 %v1394_v53  ;;  %1851 = vmatmul.mubr.f32.gmra.mxu1 %v1412_v17  ;;  %v1554_v53 = vpop.permute.xlu1 %1553 }
 0x347   : > { %1748 = vmatprep.mubr.f32.mxu0 %v2475_v35  ;;  %1856 = vmatprep.mubr.f32.mxu1 %v2475_v35 }
 0x34a   : > { %1749 = vmatmul.mubr.f32.gmra.mxu0 %v1395_v11  ;;  %1857 = vmatmul.mubr.f32.gmra.mxu1 %v1413_v18 }
 0x34b   : > { %1754 = vmatprep.mubr.f32.mxu0 %v2475_v35 }
 0x34e   : > { %1755 = vmatmul.mubr.f32.gmra.mxu0 %v1396_v54 }
 0x34f   : > { %1760 = vmatprep.mubr.f32.mxu0 %v2475_v35 }
 0x352   : > { %1761 = vmatmul.mubr.f32.gmra.mxu0 %v1397_v52 }
 0x353   : > { %1766 = vmatprep.mubr.f32.mxu0 %v2475_v35 }
 0x356   : > { %1767 = vmatmul.mubr.f32.gmra.mxu0 %v1398_v33 }
 0x357   : > { %1772 = vmatprep.mubr.f32.mxu0 %v2475_v35  ;;  %v3329_v35 = vpop.permute.xlu0 %1488 }
 0x35a   : > { %1773 = vmatmul.mubr.f32.gmra.mxu0 %v1399_v19 }
 0x35b   : > { %v3333_v49 = vpop.permute.xlu0 %1498 }
 0x35f   : > { %v3337_v23 = vpop.permute.xlu0 %1508 }
 0x363   : > { %v3341_v48 = vpop.permute.xlu0 %1518 }
 0x367   : > { %v3347_v45 = vpop.permute.xlu0 %1528 }
 0x36b   : > { %v1539_v59 = vpop.permute.xlu0 %1538 }
 0x36f   : > { %v1549_v2 = vpop.permute.xlu0 %1548 }
 0x3d6   : > { %v1672_v43 = vpop.f32.mrf.mxu0  ;;  %v1780_v5 = vpop.f32.mrf.mxu1 }
 0x3d7   : > { %v1673_v29 = vadd.f32 %v1672_v43, %v1449_v51  ;;  %v1781_v0 = vadd.f32 %v1780_v5, %v1539_v59 }
 0x3d8   : > { %v1674_v60 = vpop.f32.mrf.mxu0  ;;  %v1782_v37 = vpop.f32.mrf.mxu1 }
 0x3d9   : > { %v3359_v38 = vsel %vm1870_vm1, %v1673_v29, -inf  ;;  %v3363_v3 = vsel %vm1870_vm1, %v1781_v0, -inf  ;;  %v1675_v62 = vadd.f32 %v1674_v60, %v1449_v51  ;;  %v1783_v34 = vadd.f32 %v1782_v37, %v1539_v59  ;;  %v1559_v59 = vpop.permute.xlu0 %1558 }
 0x3da   : > { %v1678_v26 = vpop.f32.mrf.mxu0  ;;  %v1786_v36 = vpop.f32.mrf.mxu1 }
 0x3db   : > { %v3367_v39 = vsel %vm1871_vm2, %v1675_v62, -inf  ;;  %v3371_v40 = vsel %vm1871_vm2, %v1783_v34, -inf  ;;  %v1679_v41 = vadd.f32 %v1678_v26, %v1454_v55  ;;  %v1787_v61 = vadd.f32 %v1786_v36, %v1544_v4 }
 0x3dc   : > { %v1680_v63 = vpop.f32.mrf.mxu0  ;;  %v1788_v1 = vpop.f32.mrf.mxu1 }
 0x3dd   : > { %v3375_v15 = vsel %vm1870_vm1, %v1679_v41, -inf  ;;  %v3379_v6 = vsel %vm1870_vm1, %v1787_v61, -inf  ;;  %v1681_v30 = vadd.f32 %v1680_v63, %v1454_v55  ;;  %v1789_v28 = vadd.f32 %v1788_v1, %v1544_v4  ;;  %v1564_v41 = vpop.permute.xlu1 %1563 }
 0x3de   : > { %v1684_v14 = vpop.f32.mrf.mxu0  ;;  %v1792_v7 = vpop.f32.mrf.mxu1 }
 0x3df   : > { %v3383_v46 = vsel %vm1871_vm2, %v1681_v30, -inf  ;;  %v3387_v27 = vsel %vm1871_vm2, %v1789_v28, -inf  ;;  %v1685_v13 = vadd.f32 %v1684_v14, %v1459_v20  ;;  %v1793_v31 = vadd.f32 %v1792_v7, %v1549_v2 }
 0x3e0   : > { %v1686_v16 = vpop.f32.mrf.mxu0  ;;  %v1794_v12 = vpop.f32.mrf.mxu1 }
 0x3e1   : > { %v3391_v17 = vsel %vm1870_vm1, %v1685_v13, -inf  ;;  %v3395_v11 = vsel %vm1870_vm1, %v1793_v31, -inf  ;;  %v1687_v18 = vadd.f32 %v1686_v16, %v1459_v20  ;;  %v1795_v54 = vadd.f32 %v1794_v12, %v1549_v2  ;;  %v1569_v12 = vpop.permute.xlu0 %1568 }
 0x3e2   : > { %v1690_v52 = vpop.f32.mrf.mxu0  ;;  %v1798_v33 = vpop.f32.mrf.mxu1 }
 0x3e3   : > { %v3399_v19 = vsel %vm1871_vm2, %v1687_v18, -inf  ;;  %v3403_v51 = vsel %vm1871_vm2, %v1795_v54, -inf  ;;  %v1691_v55 = vadd.f32 %v1690_v52, %v3319_v10  ;;  %v1799_v24 = vadd.f32 %v1798_v33, %v1554_v53 }
 0x3e4   : > { %v1692_v58 = vpop.f32.mrf.mxu0  ;;  %v1800_v25 = vpop.f32.mrf.mxu1 }
 0x3e5   : > { %v3408_v20 = vsel %vm1870_vm1, %v1691_v55, -inf  ;;  %v3412_v43 = vsel %vm1870_vm1, %v1799_v24, -inf  ;;  %v1693_v5 = vadd.f32 %v1692_v58, %v3319_v10  ;;  %v1801_v29 = vadd.f32 %v1800_v25, %v1554_v53 }
 0x3e6   : > { %v1696_v0 = vpop.f32.mrf.mxu0  ;;  %v1804_v60 = vpop.f32.mrf.mxu1 }
 0x3e7   : > { %v3417_v37 = vsel %vm1871_vm2, %v1693_v5, -inf  ;;  %v3421_v4 = vsel %vm1871_vm2, %v1801_v29, -inf  ;;  %v1697_v62 = vadd.f32 %v1696_v0, %v3321_v21  ;;  %v1805_v34 = vadd.f32 %v1804_v60, %v1559_v59  ;;  %v1574_v29 = vpop.permute.xlu1 %1573 }
 0x3e8   : > { %v1698_v26 = vpop.f32.mrf.mxu0  ;;  %v1806_v36 = vpop.f32.mrf.mxu1 }
 0x3e9   : > { %v3426_v10 = vsel %vm1870_vm1, %v1697_v62, -inf  ;;  %v3430_v61 = vsel %vm1870_vm1, %v1805_v34, -inf  ;;  %v1699_v63 = vadd.f32 %v1698_v26, %v3321_v21  ;;  %v1807_v1 = vadd.f32 %v1806_v36, %v1559_v59 }
 0x3ea   : > { %v1702_v2 = vpop.f32.mrf.mxu0  ;;  %v1810_v30 = vpop.f32.mrf.mxu1 }
 0x3eb   : > { %v3435_v28 = vsel %vm1871_vm2, %v1699_v63, -inf  ;;  %v3439_v14 = vsel %vm1871_vm2, %v1807_v1, -inf  ;;  %v1703_v7 = vadd.f32 %v1702_v2, %v3323_v56  ;;  %v1811_v13 = vadd.f32 %v1810_v30, %v1564_v41 }
 0x3ec   : > { %v1704_v31 = vpop.f32.mrf.mxu0  ;;  %v1812_v16 = vpop.f32.mrf.mxu1 }
 0x3ed   : > { %v3444_v21 = vsel %vm1870_vm1, %v1703_v7, -inf  ;;  %v3448_v53 = vsel %vm1870_vm1, %v1811_v13, -inf  ;;  %v1705_v18 = vadd.f32 %v1704_v31, %v3323_v56  ;;  %v1813_v54 = vadd.f32 %v1812_v16, %v1564_v41  ;;  %v1579_v7 = vpop.permute.xlu0 %1578 }
 0x3ee   : > { %v1708_v52 = vpop.f32.mrf.mxu0  ;;  %v1816_v33 = vpop.f32.mrf.mxu1 }
 0x3ef   : > { %v3453_v55 = vsel %vm1871_vm2, %v1705_v18, -inf  ;;  %v3457_v24 = vsel %vm1871_vm2, %v1813_v54, -inf  ;;  %v1709_v58 = vadd.f32 %v1708_v52, %v3325_v50  ;;  %v1817_v25 = vadd.f32 %v1816_v33, %v1569_v12 }
 0x3f0   : > { %3798 = vst [vmem:[#allocation3_spill] sm:$0xff] %v3457_v24  ;;  %v1710_v59 = vpop.f32.mrf.mxu0  ;;  %v1818_v5 = vpop.f32.mrf.mxu1 }
 0x3f1   : > { %v3462_v56 = vsel %vm1870_vm1, %v1709_v58, -inf  ;;  %v3466_v0 = vsel %vm1870_vm1, %v1817_v25, -inf  ;;  %v1711_v60 = vadd.f32 %v1710_v59, %v3325_v50  ;;  %v1819_v62 = vadd.f32 %v1818_v5, %v1569_v12  ;;  %v1584_v5 = vpop.permute.xlu1 %1583 }
 0x3f2   : > { %v1714_v34 = vpop.f32.mrf.mxu0  ;;  %v1822_v26 = vpop.f32.mrf.mxu1 }
 0x3f3   : > { %v3471_v36 = vsel %vm1871_vm2, %v1711_v60, -inf  ;;  %v3475_v41 = vsel %vm1871_vm2, %v1819_v62, -inf  ;;  %v1715_v63 = vadd.f32 %v1714_v34, %v3327_v22  ;;  %v1823_v1 = vadd.f32 %v1822_v26, %v1574_v29 }
 0x3f4   : > { %3799 = vst [vmem:[#allocation4_spill] sm:$0xff] %v3475_v41  ;;  %v1716_v2 = vpop.f32.mrf.mxu0  ;;  %v1824_v30 = vpop.f32.mrf.mxu1 }
 0x3f5   : > { %v3480_v50 = vsel %vm1870_vm1, %v1715_v63, -inf  ;;  %v3484_v13 = vsel %vm1870_vm1, %v1823_v1, -inf  ;;  %v1717_v31 = vadd.f32 %v1716_v2, %v3327_v22  ;;  %v1825_v16 = vadd.f32 %v1824_v30, %v1574_v29 }
 0x3f6   : > { %3800 = vst [vmem:[#allocation5_spill] sm:$0xff] %v3484_v13  ;;  %v1720_v12 = vpop.f32.mrf.mxu0  ;;  %v1828_v18 = vpop.f32.mrf.mxu1 }
 0x3f7   : > { %v3489_v54 = vsel %vm1871_vm2, %v1717_v31, -inf  ;;  %v3493_v52 = vsel %vm1871_vm2, %v1825_v16, -inf  ;;  %v1721_v33 = vadd.f32 %v1720_v12, %v3329_v35  ;;  %v1829_v58 = vadd.f32 %v1828_v18, %v1579_v7  ;;  %v1589_v12 = vpop.permute.xlu0 %1588 }
 0x3f8   : > { %3801 = vst [vmem:[#allocation6_spill] sm:$0xff] %v3493_v52  ;;  %v1722_v25 = vpop.f32.mrf.mxu0  ;;  %v1830_v59 = vpop.f32.mrf.mxu1 }
 0x3f9   : > { %v3498_v22 = vsel %vm1870_vm1, %v1721_v33, -inf  ;;  %v3502_v29 = vsel %vm1870_vm1, %v1829_v58, -inf  ;;  %v1723_v60 = vadd.f32 %v1722_v25, %v3329_v35  ;;  %v1831_v62 = vadd.f32 %v1830_v59, %v1579_v7 }
 0x3fa   : > { %3802 = vst [vmem:[#allocation7_spill] sm:$0xff] %v3502_v29  ;;  %v1726_v34 = vpop.f32.mrf.mxu0  ;;  %v1834_v26 = vpop.f32.mrf.mxu1 }
 0x3fb   : > { %v3507_v63 = vsel %vm1871_vm2, %v1723_v60, -inf  ;;  %v3511_v1 = vsel %vm1871_vm2, %v1831_v62, -inf  ;;  %v1727_v2 = vadd.f32 %v1726_v34, %v3331_v32  ;;  %v1835_v30 = vadd.f32 %v1834_v26, %v1584_v5 }
 0x3fc   : > { %3803 = vst [vmem:[#allocation8_spill] sm:$0xff] %v3511_v1  ;;  %v1728_v31 = vpop.f32.mrf.mxu0  ;;  %v1836_v16 = vpop.f32.mrf.mxu1 }
 0x3fd   : > { %v3516_v35 = vsel %vm1870_vm1, %v1727_v2, -inf  ;;  %v3520_v7 = vsel %vm1870_vm1, %v1835_v30, -inf  ;;  %v1729_v18 = vadd.f32 %v1728_v31, %v3331_v32  ;;  %v1837_v33 = vadd.f32 %v1836_v16, %v1584_v5  ;;  %v1594_v30 = vpop.permute.xlu1 %1593 }
 0x3fe   : > { %3804 = vst [vmem:[#allocation9_spill] sm:$0xff] %v3520_v7  ;;  %v1732_v58 = vpop.f32.mrf.mxu0  ;;  %v1840_v25 = vpop.f32.mrf.mxu1 }
 0x3ff   : > { %v3525_v59 = vsel %vm1871_vm2, %v1729_v18, -inf  ;;  %v3529_v60 = vsel %vm1871_vm2, %v1837_v33, -inf  ;;  %v1733_v62 = vadd.f32 %v1732_v58, %v3333_v49  ;;  %v1841_v34 = vadd.f32 %v1840_v25, %v1589_v12 }
 0x400   : > { %3805 = vst [vmem:[#allocation10_spill] sm:$0xff] %v3529_v60  ;;  %v1734_v26 = vpop.f32.mrf.mxu0  ;;  %v1842_v2 = vpop.f32.mrf.mxu1 }
 0x401   : > { %v3534_v32 = vsel %vm1870_vm1, %v1733_v62, -inf  ;;  %v3538_v5 = vsel %vm1870_vm1, %v1841_v34, -inf  ;;  %v1735_v31 = vadd.f32 %v1734_v26, %v3333_v49  ;;  %v1843_v16 = vadd.f32 %v1842_v2, %v1589_v12  ;;  %v1599_v34 = vpop.permute.xlu0 %1598 }
 0x402   : > { %3806 = vst [vmem:[#allocation11_spill] sm:$0xff] %v3538_v5  ;;  %v1738_v18 = vpop.f32.mrf.mxu0  ;;  %v1846_v33 = vpop.f32.mrf.mxu1 }
 0x403   : > { %v3543_v58 = vsel %vm1871_vm2, %v1735_v31, -inf  ;;  %v3547_v25 = vsel %vm1871_vm2, %v1843_v16, -inf  ;;  %v1739_v62 = vadd.f32 %v1738_v18, %v3335_v57  ;;  %v1847_v60 = vadd.f32 %v1846_v33, %v1594_v30 }
 0x404   : > { %3807 = vst [vmem:[#allocation12_spill] sm:$0xff] %v3547_v25  ;;  %v1740_v1 = vpop.f32.mrf.mxu0  ;;  %v1848_v52 = vpop.f32.mrf.mxu1 }
 0x405   : > { %v3552_v49 = vsel %vm1870_vm1, %v1739_v62, -inf  ;;  %v3556_v12 = vsel %vm1870_vm1, %v1847_v60, -inf  ;;  %v1741_v26 = vadd.f32 %v1740_v1, %v3335_v57  ;;  %v1849_v2 = vadd.f32 %v1848_v52, %v1594_v30  ;;  %v1604_v60 = vpop.permute.xlu1 %1603 }
 0x406   : > { %3808 = vst [vmem:[#allocation13_spill] sm:$0xff] %v3556_v12  ;;  %v1744_v31 = vpop.f32.mrf.mxu0  ;;  %v1852_v16 = vpop.f32.mrf.mxu1 }
 0x407   : > { %v3561_v18 = vsel %vm1871_vm2, %v1741_v26, -inf  ;;  %v3565_v33 = vsel %vm1871_vm2, %v1849_v2, -inf  ;;  %v1745_v62 = vadd.f32 %v1744_v31, %v3337_v23  ;;  %v1853_v25 = vadd.f32 %v1852_v16, %v1599_v34 }
 0x408   : > { %3809 = vst [vmem:[#allocation14_spill] sm:$0xff] %v3565_v33  ;;  %v1746_v41 = vpop.f32.mrf.mxu0  ;;  %v1854_v5 = vpop.f32.mrf.mxu1 }
 0x409   : > { %v3570_v57 = vsel %vm1870_vm1, %v1745_v62, -inf  ;;  %v3574_v52 = vsel %vm1870_vm1, %v1853_v25, -inf  ;;  %v1747_v1 = vadd.f32 %v1746_v41, %v3337_v23  ;;  %v1855_v30 = vadd.f32 %v1854_v5, %v1599_v34 }
 0x40a   : > { %3810 = vst [vmem:[#allocation15_spill] sm:$0xff] %v3574_v52  ;;  %v1750_v26 = vpop.f32.mrf.mxu0  ;;  %v1858_v2 = vpop.f32.mrf.mxu1 }
 0x40b   : > { %v3579_v31 = vsel %vm1871_vm2, %v1747_v1, -inf  ;;  %v3583_v16 = vsel %vm1871_vm2, %v1855_v30, -inf  ;;  %v1751_v62 = vadd.f32 %v1750_v26, %v3339_v47  ;;  %v1859_v33 = vadd.f32 %v1858_v2, %v1604_v60 }
 0x40c   : > { %3811 = vst [vmem:[#allocation16_spill] sm:$0xff] %v3583_v16  ;;  %v1752_v12 = vpop.f32.mrf.mxu0  ;;  %v1860_v7 = vpop.f32.mrf.mxu1 }
 0x40d   : > { %v3588_v25 = vsel %vm1870_vm1, %v1751_v62, -inf  ;;  %v3592_v23 = vsel %vm1870_vm1, %v1859_v33, -inf  ;;  %v1753_v41 = vadd.f32 %v1752_v12, %v3339_v47  ;;  %v1861_v5 = vadd.f32 %v1860_v7, %v1604_v60 }
 0x40e   : > { %3812 = vst [vmem:[#allocation17_spill] sm:$0xff] %v3592_v23  ;;  %v1756_v34 = vpop.f32.mrf.mxu0 }
 0x40f   : > { %v3597_v1 = vsel %vm1871_vm2, %v1753_v41, -inf  ;;  %v3601_v30 = vsel %vm1871_vm2, %v1861_v5, -inf  ;;  %v1757_v26 = vadd.f32 %v1756_v34, %v3341_v48 }
 0x410   : > { %3813 = vst [vmem:[#allocation18_spill] sm:$0xff] %v3601_v30  ;;  %v1758_v2 = vpop.f32.mrf.mxu0 }
 0x411   : > { %v3606_v62 = vsel %vm1870_vm1, %v1757_v26, -inf  ;;  %v1759_v33 = vadd.f32 %v1758_v2, %v3341_v48 }
 0x412   : > { %v1762_v47 = vpop.f32.mrf.mxu0 }
 0x413   : > { %v3611_v7 = vsel %vm1871_vm2, %v1759_v33, -inf  ;;  %v1763_v12 = vadd.f32 %v1762_v47, %v3345_v9 }
 0x414   : > { %v1764_v60 = vpop.f32.mrf.mxu0 }
 0x415   : > { %v3616_v41 = vsel %vm1870_vm1, %v1763_v12, -inf  ;;  %v1765_v5 = vadd.f32 %v1764_v60, %v3345_v9 }
 0x416   : > { %v1768_v34 = vpop.f32.mrf.mxu0 }
 0x417   : > { %v3621_v26 = vsel %vm1871_vm2, %v1765_v5, -inf  ;;  %v1769_v48 = vadd.f32 %v1768_v34, %v3347_v45 }
 0x418   : > { %v1770_v2 = vpop.f32.mrf.mxu0 }
 0x419   : > { %v3626_v33 = vsel %vm1870_vm1, %v1769_v48, -inf  ;;  %v1771_v47 = vadd.f32 %v1770_v2, %v3347_v45 }
 0x41a   : > { %v1774_v30 = vpop.f32.mrf.mxu0 }
 0x41b   : > { %v3631_v12 = vsel %vm1871_vm2, %v1771_v47, -inf  ;;  %v1775_v9 = vadd.f32 %v1774_v30, %v3351_v44  ;;  %1943 = sbr.rel (%p2351_p7) target bundleno = 1073 (0x431), region = 60 }
 0x41c   : > { %v1776_v60 = vpop.f32.mrf.mxu0 }
 0x41d   : > { %v3636_v5 = vsel %vm1870_vm1, %v1775_v9, -inf  ;;  %v1777_v34 = vadd.f32 %v1776_v60, %v3351_v44 }
 0x41f   : > { %v3641_v48 = vsel %vm1871_vm2, %v1777_v34, -inf }
 0x420   : > { %v2476_v45 = vmov -inf  }
 0x421   : > { %1944 = vst [vmem:[#allocation2 + $0xb0] sm:$0xff] %v2476_v45  ;;  %1945 = vst [vmem:[#allocation2] sm:$0xff] %v2476_v45 }
 0x422   : > { %1946 = vst [vmem:[#allocation2 + $0xd8] sm:$0xff] %v2476_v45  ;;  %1947 = vst [vmem:[#allocation2 + $0x18] sm:$0xff] %v2476_v45 }
 0x423   : > { %1948 = vst [vmem:[#allocation2 + $0x50] sm:$0xff] %v2476_v45  ;;  %1949 = vst [vmem:[#allocation2 + $0x68] sm:$0xff] %v2476_v45 }
 0x424   : > { %1950 = vst [vmem:[#allocation2 + $0x30] sm:$0xff] %v2476_v45  ;;  %1951 = vst [vmem:[#allocation2 + $0x48] sm:$0xff] %v2476_v45 }
 0x425   : > { %1952 = vst [vmem:[#allocation2 + $0x80] sm:$0xff] %v2476_v45  ;;  %1953 = vst [vmem:[#allocation2 + $0x88] sm:$0xff] %v2476_v45 }
 0x426   : > { %1954 = vst [vmem:[#allocation2 + $0xe8] sm:$0xff] %v2476_v45  ;;  %1955 = vst [vmem:[#allocation2 + $0xb8] sm:$0xff] %v2476_v45 }
 0x427   : > { %1956 = vst [vmem:[#allocation2 + $0x60] sm:$0xff] %v2476_v45  ;;  %1957 = vst [vmem:[#allocation2 + $0xf0] sm:$0xff] %v2476_v45 }
 0x428   : > { %1958 = vst [vmem:[#allocation2 + $0x8] sm:$0xff] %v2476_v45  ;;  %1959 = vst [vmem:[#allocation2 + $0x78] sm:$0xff] %v2476_v45 }
 0x429   : > { %1960 = vst [vmem:[#allocation2 + $0x38] sm:$0xff] %v2476_v45  ;;  %1961 = vst [vmem:[#allocation2 + $0x58] sm:$0xff] %v2476_v45 }
 0x42a   : > { %1962 = vst [vmem:[#allocation2 + $0x40] sm:$0xff] %v2476_v45  ;;  %1963 = vst [vmem:[#allocation2 + $0xc8] sm:$0xff] %v2476_v45 }
 0x42b   : > { %1964 = vst [vmem:[#allocation2 + $0xe0] sm:$0xff] %v2476_v45  ;;  %1965 = vst [vmem:[#allocation2 + $0x90] sm:$0xff] %v2476_v45 }
 0x42c   : > { %1966 = vst [vmem:[#allocation2 + $0x70] sm:$0xff] %v2476_v45  ;;  %1967 = vst [vmem:[#allocation2 + $0xc0] sm:$0xff] %v2476_v45 }
 0x42d   : > { %1968 = vst [vmem:[#allocation2 + $0xa8] sm:$0xff] %v2476_v45  ;;  %1969 = vst [vmem:[#allocation2 + $0xd0] sm:$0xff] %v2476_v45 }
 0x42e   : > { %1970 = vst [vmem:[#allocation2 + $0x10] sm:$0xff] %v2476_v45  ;;  %1971 = vst [vmem:[#allocation2 + $0x28] sm:$0xff] %v2476_v45 }
 0x42f   : > { %1972 = vst [vmem:[#allocation2 + $0xa0] sm:$0xff] %v2476_v45  ;;  %1973 = vst [vmem:[#allocation2 + $0xf8] sm:$0xff] %v2476_v45 }
 0x430   : > { %1974 = vst [vmem:[#allocation2 + $0x20] sm:$0xff] %v2476_v45  ;;  %1975 = vst [vmem:[#allocation2 + $0x98] sm:$0xff] %v2476_v45 }
 0x431 PF: > { %v1976_v8 = vld [vmem:[#allocation2 + $0xb0] sm:$0xff]  ;;  %v1977_v44 = vld [vmem:[#allocation2] sm:$0xff]  ;;  %v1978_v42 = vld [vmem:[#allocation2 + $0xd8] sm:$0xff]  ;;  %p2352_p8 = scmp.ne.s32.totalorder %s2456_s30, 2 }
 0x432   : > { %v2008_v30 = vmax.f32 %v1976_v8, %v3359_v38  ;;  %v2009_v2 = vmax.f32 %v1977_v44, %v3375_v15  ;;  %v2010_v47 = vmax.f32 %v1978_v42, %v3391_v17  ;;  %v1979_v9 = vld [vmem:[#allocation2 + $0x18] sm:$0xff]  ;;  %v1980_v60 = vld [vmem:[#allocation2 + $0x50] sm:$0xff]  ;;  %v1981_v34 = vld [vmem:[#allocation2 + $0x68] sm:$0xff] }
 0x433   : > { %v2011_v16 = vmax.f32 %v1979_v9, %v3408_v20  ;;  %v2012_v23 = vmax.f32 %v1980_v60, %v3426_v10  ;;  %v2013_v52 = vmax.f32 %v1981_v34, %v3444_v21  ;;  %v1982_v45 = vld [vmem:[#allocation2 + $0x30] sm:$0xff]  ;;  %v1983_v24 = vld [vmem:[#allocation2 + $0x48] sm:$0xff]  ;;  %v1984_v29 = vld [vmem:[#allocation2 + $0x80] sm:$0xff] }
 0x434   : > { %v2040_v13 = vmax.f32 %v2008_v30, %v3367_v39  ;;  %v2041_v38 = vmax.f32 %v2009_v2, %v3383_v46  ;;  %v2042_v15 = vmax.f32 %v2010_v47, %v3399_v19  ;;  %v2014_v17 = vmax.f32 %v1982_v45, %v3462_v56  ;;  %v1985_v8 = vld [vmem:[#allocation2 + $0x88] sm:$0xff]  ;;  %v1987_v42 = vld [vmem:[#allocation2 + $0xb8] sm:$0xff]  ;;  %v1988_v60 = vld [vmem:[#allocation2 + $0x60] sm:$0xff] }
 0x435   : > { %v1986_v44 = vld [vmem:[#allocation2 + $0xe8] sm:$0xff]  ;;  %v2043_v20 = vmax.f32 %v2011_v16, %v3417_v37  ;;  %v2044_v10 = vmax.f32 %v2012_v23, %v3435_v28  ;;  %v2045_v21 = vmax.f32 %v2013_v52, %v3453_v55  ;;  %v2015_v9 = vmax.f32 %v1983_v24, %v3480_v50  ;;  %v1989_v34 = vld [vmem:[#allocation2 + $0xf0] sm:$0xff]  ;;  %v1991_v16 = vld [vmem:[#allocation2 + $0x78] sm:$0xff] }
 0x436   : > { %v1990_v39 = vld [vmem:[#allocation2 + $0x8] sm:$0xff]  ;;  %2072 = vst [vmem:[#allocation2 + $0xb0] sm:$0xff] %v2040_v13  ;;  %2073 = vst [vmem:[#allocation2] sm:$0xff] %v2041_v38  ;;  %v2046_v46 = vmax.f32 %v2014_v17, %v3471_v36  ;;  %v2016_v19 = vmax.f32 %v1984_v29, %v3498_v22  ;;  %v2017_v56 = vmax.f32 %v1985_v8, %v3516_v35  ;;  %v1992_v13 = vld [vmem:[#allocation2 + $0x38] sm:$0xff] }
 0x437   : > { %2074 = vst [vmem:[#allocation2 + $0xd8] sm:$0xff] %v2042_v15  ;;  %v2018_v37 = vmax.f32 %v1986_v44, %v3534_v32  ;;  %2075 = vst [vmem:[#allocation2 + $0x18] sm:$0xff] %v2043_v20  ;;  %v2047_v28 = vmax.f32 %v2015_v9, %v3489_v54  ;;  %v2019_v55 = vmax.f32 %v1987_v42, %v3552_v49  ;;  %v1993_v36 = vld [vmem:[#allocation2 + $0x58] sm:$0xff]  ;;  %v1994_v52 = vld [vmem:[#allocation2 + $0x40] sm:$0xff] }
 0x438   : > { %2076 = vst [vmem:[#allocation2 + $0x50] sm:$0xff] %v2044_v10  ;;  %2077 = vst [vmem:[#allocation2 + $0x68] sm:$0xff] %v2045_v21  ;;  %v2020_v24 = vmax.f32 %v1988_v60, %v3570_v57  ;;  %v2021_v50 = vmax.f32 %v1989_v34, %v3588_v25  ;;  %v2048_v22 = vmax.f32 %v2016_v19, %v3507_v63  ;;  %v1995_v23 = vld [vmem:[#allocation2 + $0xc8] sm:$0xff]  ;;  %v1996_v54 = vld [vmem:[#allocation2 + $0xe0] sm:$0xff] }
 0x439   : > { %2078 = vst [vmem:[#allocation2 + $0x30] sm:$0xff] %v2046_v46  ;;  %v2049_v29 = vmax.f32 %v2017_v56, %v3525_v59  ;;  %v2050_v35 = vmax.f32 %v2018_v37, %v3543_v58  ;;  %v2022_v32 = vmax.f32 %v1990_v39, %v3606_v62  ;;  %v1997_v30 = vld [vmem:[#allocation2 + $0x90] sm:$0xff]  ;;  %2079 = vst [vmem:[#allocation2 + $0x48] sm:$0xff] %v2047_v28  ;;  %v1999_v45 = vld [vmem:[#allocation2 + $0xc0] sm:$0xff] }
 0x43a   : > { %v2051_v49 = vmax.f32 %v2019_v55, %v3561_v18  ;;  %v2052_v57 = vmax.f32 %v2020_v24, %v3579_v31  ;;  %v2053_v25 = vmax.f32 %v2021_v50, %v3597_v1  ;;  %v2023_v2 = vmax.f32 %v1991_v16, %v3616_v41  ;;  %v1998_v47 = vld [vmem:[#allocation2 + $0x70] sm:$0xff]  ;;  %2080 = vst [vmem:[#allocation2 + $0x80] sm:$0xff] %v2048_v22  ;;  %v2000_v38 = vld [vmem:[#allocation2 + $0xa8] sm:$0xff]  ;;  %v2005_v44 = vld [vmem:[#allocation2 + $0xf8] sm:$0xff] }
 0x43b   : > { %2081 = vst [vmem:[#allocation2 + $0x88] sm:$0xff] %v2049_v29  ;;  %2082 = vst [vmem:[#allocation2 + $0xe8] sm:$0xff] %v2050_v35  ;;  %v2054_v63 = vmax.f32 %v2022_v32, %v3611_v7  ;;  %v2024_v59 = vmax.f32 %v1992_v13, %v3626_v33  ;;  %v2025_v58 = vmax.f32 %v1993_v36, %v3636_v5  ;;  %v2001_v7 = vld [vmem:[#allocation2 + $0xd0] sm:$0xff]  ;;  %v2003_v8 = vld [vmem:[#allocation2 + $0x28] sm:$0xff] }
 0x43c   : > { %v2026_v62 = vmax.f32 %v1994_v52, %v3363_v3  ;;  %2083 = vst [vmem:[#allocation2 + $0xb8] sm:$0xff] %v2051_v49  ;;  %2084 = vst [vmem:[#allocation2 + $0x60] sm:$0xff] %v2052_v57  ;;  %v2055_v18 = vmax.f32 %v2023_v2, %v3621_v26  ;;  %v2027_v31 = vmax.f32 %v1995_v23, %v3379_v6  ;;  %v2002_v15 = vld [vmem:[#allocation2 + $0x10] sm:$0xff]  ;;  %v2004_v26 = vld [vmem:[#allocation2 + $0xa0] sm:$0xff] }
 0x43d   : > { %2085 = vst [vmem:[#allocation2 + $0xf0] sm:$0xff] %v2053_v25  ;;  %v2028_v1 = vmax.f32 %v1996_v54, %v3395_v11  ;;  %v2029_v41 = vmax.f32 %v1997_v30, %v3412_v43  ;;  %2086 = vst [vmem:[#allocation2 + $0x8] sm:$0xff] %v2054_v63  ;;  %v2056_v33 = vmax.f32 %v2024_v59, %v3631_v12  ;;  %v2006_v20 = vld [vmem:[#allocation2 + $0x20] sm:$0xff]  ;;  %v3814_v12 = vld [vmem:[#allocation5_spill] sm:$0xff] }
 0x43e   : > { %v2057_v3 = vmax.f32 %v2025_v58, %v3641_v48  ;;  %v2058_v5 = vmax.f32 %v2026_v62, %v3371_v40  ;;  %v2030_v17 = vmax.f32 %v1998_v47, %v3430_v61  ;;  %2087 = vst [vmem:[#allocation2 + $0x78] sm:$0xff] %v2055_v18  ;;  %v2059_v6 = vmax.f32 %v2027_v31, %v3387_v27  ;;  %v3815_v10 = vld [vmem:[#allocation7_spill] sm:$0xff]  ;;  %v2007_v9 = vld [vmem:[#allocation2 + $0x98] sm:$0xff]  ;;  %v3819_v39 = vld [vmem:[#allocation13_spill] sm:$0xff] }
 0x43f   : > { %v2060_v11 = vmax.f32 %v2028_v1, %v3403_v51  ;;  %v2061_v43 = vmax.f32 %v2029_v41, %v3421_v4  ;;  %v2031_v42 = vmax.f32 %v1999_v45, %v3448_v53  ;;  %2088 = vst [vmem:[#allocation2 + $0x38] sm:$0xff] %v2056_v33  ;;  %v2032_v61 = vmax.f32 %v2000_v38, %v3466_v0  ;;  %v3816_v27 = vld [vmem:[#allocation3_spill] sm:$0xff]  ;;  %v3817_v4 = vld [vmem:[#allocation9_spill] sm:$0xff]  ;;  %v3821_v0 = vld [vmem:[#allocation6_spill] sm:$0xff] }
 0x440   : > { %2089 = vst [vmem:[#allocation2 + $0x58] sm:$0xff] %v2057_v3  ;;  %2090 = vst [vmem:[#allocation2 + $0x40] sm:$0xff] %v2058_v5  ;;  %v2062_v40 = vmax.f32 %v2030_v17, %v3439_v14  ;;  %v2033_v48 = vmax.f32 %v2001_v7, %v3814_v12  ;;  %v2034_v21 = vmax.f32 %v2002_v15, %v3815_v10  ;;  %v3818_v60 = vld [vmem:[#allocation11_spill] sm:$0xff]  ;;  %v3820_v14 = vld [vmem:[#allocation4_spill] sm:$0xff] }
 0x441   : > { %2091 = vst [vmem:[#allocation2 + $0xc8] sm:$0xff] %v2059_v6  ;;  %2092 = vst [vmem:[#allocation2 + $0xe0] sm:$0xff] %v2060_v11  ;;  %v2063_v51 = vmax.f32 %v2031_v42, %v3816_v27  ;;  %v2035_v53 = vmax.f32 %v2003_v8, %v3817_v4  ;;  %v2036_v34 = vmax.f32 %v2004_v26, %v3818_v60  ;;  %v3822_v37 = vld [vmem:[#allocation8_spill] sm:$0xff]  ;;  %v3823_v28 = vld [vmem:[#allocation15_spill] sm:$0xff] }
 0x442   : > { %2093 = vst [vmem:[#allocation2 + $0x90] sm:$0xff] %v2061_v43  ;;  %v2037_v46 = vmax.f32 %v2005_v44, %v3819_v39  ;;  %2094 = vst [vmem:[#allocation2 + $0x70] sm:$0xff] %v2062_v40  ;;  %v2064_v19 = vmax.f32 %v2032_v61, %v3820_v14  ;;  %v2065_v56 = vmax.f32 %v2033_v48, %v3821_v0  ;;  %v3824_v24 = vld [vmem:[#allocation10_spill] sm:$0xff]  ;;  %v3825_v13 = vld [vmem:[#allocation12_spill] sm:$0xff] }
 0x443   : > { %v2066_v16 = vmax.f32 %v2034_v21, %v3822_v37  ;;  %v2038_v55 = vmax.f32 %v2006_v20, %v3823_v28  ;;  %2095 = vst [vmem:[#allocation2 + $0xc0] sm:$0xff] %v2063_v51  ;;  %v2067_v50 = vmax.f32 %v2035_v53, %v3824_v24  ;;  %v2068_v36 = vmax.f32 %v2036_v34, %v3825_v13  ;;  %v3826_v52 = vld [vmem:[#allocation14_spill] sm:$0xff]  ;;  %v3827_v29 = vld [vmem:[#allocation17_spill] sm:$0xff]  ;;  %v3828_v32 = vld [vmem:[#allocation16_spill] sm:$0xff] }
 0x444   : > { %v2069_v22 = vmax.f32 %v2037_v46, %v3826_v52  ;;  %v2039_v35 = vmax.f32 %v2007_v9, %v3827_v29  ;;  %2096 = vst [vmem:[#allocation2 + $0xa8] sm:$0xff] %v2064_v19  ;;  %2097 = vst [vmem:[#allocation2 + $0xd0] sm:$0xff] %v2065_v56  ;;  %v3829_v54 = vld [vmem:[#allocation18_spill] sm:$0xff]  ;;  %2107 = sbr.rel (%p2352_p8) target bundleno = 1297 (0x511), region = 64 }
 0x445   : > { %2098 = vst [vmem:[#allocation2 + $0x10] sm:$0xff] %v2066_v16  ;;  %v2070_v23 = vmax.f32 %v2038_v55, %v3828_v32  ;;  %2099 = vst [vmem:[#allocation2 + $0x28] sm:$0xff] %v2067_v50 }
 0x446   : > { %2100 = vst [vmem:[#allocation2 + $0xa0] sm:$0xff] %v2068_v36  ;;  %2101 = vst [vmem:[#allocation2 + $0xf8] sm:$0xff] %v2069_v22  ;;  %v2071_v30 = vmax.f32 %v2039_v35, %v3829_v54 }
 0x447   : > { %2102 = vst [vmem:[#allocation2 + $0x20] sm:$0xff] %v2070_v23 }
 0x448   : > { %2103 = vst [vmem:[#allocation2 + $0x98] sm:$0xff] %v2071_v30 }
 0x449   : > { %v2110_v49 = vld [vmem:[#allocation2 + $0xd8] sm:$0xff]  ;;  %v2108_v57 = vld [vmem:[#allocation2 + $0xb0] sm:$0xff]  ;;  %v2109_v2 = vld [vmem:[#allocation2] sm:$0xff]  ;;  %vm2204_vm3 = vcmask 7168  }
 0x44a   : > { %2144 = vmax.xlane.f32.xlu1 %v2110_v49  ;;  %2140 = vmax.xlane.f32.xlu0 %v2108_v57  ;;  %v2111_v25 = vld [vmem:[#allocation2 + $0x18] sm:$0xff]  ;;  %v2113_v47 = vld [vmem:[#allocation2 + $0x68] sm:$0xff]  ;;  %v2112_v63 = vld [vmem:[#allocation2 + $0x50] sm:$0xff] }
 0x44b   : > { %v2115_v59 = vld [vmem:[#allocation2 + $0x48] sm:$0xff]  ;;  %v2114_v58 = vld [vmem:[#allocation2 + $0x30] sm:$0xff]  ;;  %v2116_v45 = vld [vmem:[#allocation2 + $0x80] sm:$0xff] }
 0x44c   : > { %v2117_v62 = vld [vmem:[#allocation2 + $0x88] sm:$0xff]  ;;  %v2119_v18 = vld [vmem:[#allocation2 + $0xb8] sm:$0xff]  ;;  %v2121_v1 = vld [vmem:[#allocation2 + $0xf0] sm:$0xff] }
 0x44d   : > { %v2118_v31 = vld [vmem:[#allocation2 + $0xe8] sm:$0xff]  ;;  %v2120_v41 = vld [vmem:[#allocation2 + $0x60] sm:$0xff]  ;;  %v2123_v38 = vld [vmem:[#allocation2 + $0x78] sm:$0xff] }
 0x44e   : > { %2146 = vmax.xlane.f32.xlu1 %v2111_v25  ;;  %2142 = vmax.xlane.f32.xlu0 %v2109_v2  ;;  %v2122_v7 = vld [vmem:[#allocation2 + $0x8] sm:$0xff]  ;;  %v2125_v15 = vld [vmem:[#allocation2 + $0x58] sm:$0xff]  ;;  %v2126_v5 = vld [vmem:[#allocation2 + $0x40] sm:$0xff] }
 0x44f   : > { %v2124_v33 = vld [vmem:[#allocation2 + $0x38] sm:$0xff]  ;;  %v2127_v3 = vld [vmem:[#allocation2 + $0xc8] sm:$0xff]  ;;  %v2129_v17 = vld [vmem:[#allocation2 + $0x90] sm:$0xff] }
 0x450   : > { %v2128_v8 = vld [vmem:[#allocation2 + $0xe0] sm:$0xff]  ;;  %v2130_v44 = vld [vmem:[#allocation2 + $0x70] sm:$0xff]  ;;  %v2132_v11 = vld [vmem:[#allocation2 + $0xa8] sm:$0xff] }
 0x451   : > { %v2131_v26 = vld [vmem:[#allocation2 + $0xc0] sm:$0xff]  ;;  %v2133_v6 = vld [vmem:[#allocation2 + $0xd0] sm:$0xff]  ;;  %v2135_v43 = vld [vmem:[#allocation2 + $0x28] sm:$0xff] }
 0x452   : > { %2150 = vmax.xlane.f32.xlu1 %v2113_v47  ;;  %2148 = vmax.xlane.f32.xlu0 %v2112_v63  ;;  %v2134_v42 = vld [vmem:[#allocation2 + $0x10] sm:$0xff]  ;;  %v2137_v20 = vld [vmem:[#allocation2 + $0xf8] sm:$0xff]  ;;  %v2136_v40 = vld [vmem:[#allocation2 + $0xa0] sm:$0xff] }
 0x453   : > { %v2139_v61 = vld [vmem:[#allocation2 + $0x98] sm:$0xff]  ;;  %v2138_v12 = vld [vmem:[#allocation2 + $0x20] sm:$0xff] }
 0x456   : > { %2154 = vmax.xlane.f32.xlu1 %v2115_v59  ;;  %2152 = vmax.xlane.f32.xlu0 %v2114_v58 }
 0x45a   : > { %2158 = vmax.xlane.f32.xlu1 %v2117_v62  ;;  %2156 = vmax.xlane.f32.xlu0 %v2116_v45 }
 0x45e   : > { %2162 = vmax.xlane.f32.xlu1 %v2119_v18  ;;  %2160 = vmax.xlane.f32.xlu0 %v2118_v31 }
 0x462   : > { %2166 = vmax.xlane.f32.xlu1 %v2121_v1  ;;  %2164 = vmax.xlane.f32.xlu0 %v2120_v41 }
 0x466   : > { %2170 = vmax.xlane.f32.xlu1 %v2123_v38  ;;  %2168 = vmax.xlane.f32.xlu0 %v2122_v7 }
 0x46a   : > { %2174 = vmax.xlane.f32.xlu1 %v2125_v15  ;;  %2172 = vmax.xlane.f32.xlu0 %v2124_v33 }
 0x46e   : > { %2178 = vmax.xlane.f32.xlu1 %v2127_v3  ;;  %2176 = vmax.xlane.f32.xlu0 %v2126_v5 }
 0x472   : > { %2182 = vmax.xlane.f32.xlu1 %v2129_v17  ;;  %2180 = vmax.xlane.f32.xlu0 %v2128_v8 }
 0x476   : > { %2186 = vmax.xlane.f32.xlu1 %v2131_v26  ;;  %2184 = vmax.xlane.f32.xlu0 %v2130_v44 }
 0x47a   : > { %2190 = vmax.xlane.f32.xlu1 %v2133_v6  ;;  %2188 = vmax.xlane.f32.xlu0 %v2132_v11 }
 0x47e   : > { %2194 = vmax.xlane.f32.xlu1 %v2135_v43  ;;  %2192 = vmax.xlane.f32.xlu0 %v2134_v42 }
 0x482   : > { %2198 = vmax.xlane.f32.xlu1 %v2137_v20  ;;  %2196 = vmax.xlane.f32.xlu0 %v2136_v40 }
 0x486   : > { %2202 = vmax.xlane.f32.xlu1 %v2139_v61  ;;  %2200 = vmax.xlane.f32.xlu0 %v2138_v12 }
 0x4d3   : > { %v2145_v48 = vpop.xlane.xlu1 %2144  ;;  %v2141_v10 = vpop.xlane.xlu0 %2140 }
 0x4d4   : > { %2207 = vst.msk [vmem:[%s2577_s27 + $0x10] sm:$0xff] %vm2204_vm3, %v2145_v48  ;;  %2205 = vst.msk [vmem:[%s2577_s27] sm:$0xff] %vm2204_vm3, %v2141_v10 }
 0x4d7   : > { %v2147_v21 = vpop.xlane.xlu1 %2146  ;;  %v2143_v9 = vpop.xlane.xlu0 %2142 }
 0x4d8   : > { %2208 = vst.msk [vmem:[%s2577_s27 + $0x18] sm:$0xff] %vm2204_vm3, %v2147_v21  ;;  %2206 = vst.msk [vmem:[%s2577_s27 + $0x8] sm:$0xff] %vm2204_vm3, %v2143_v9 }
 0x4db   : > { %v2151_v27 = vpop.xlane.xlu1 %2150  ;;  %v2149_v51 = vpop.xlane.xlu0 %2148 }
 0x4dc   : > { %2210 = vst.msk [vmem:[%s2577_s27 + $0x28] sm:$0xff] %vm2204_vm3, %v2151_v27  ;;  %2209 = vst.msk [vmem:[%s2577_s27 + $0x20] sm:$0xff] %vm2204_vm3, %v2149_v51 }
 0x4df   : > { %v2155_v4 = vpop.xlane.xlu1 %2154  ;;  %v2153_v53 = vpop.xlane.xlu0 %2152 }
 0x4e0   : > { %2212 = vst.msk [vmem:[%s2577_s27 + $0x38] sm:$0xff] %vm2204_vm3, %v2155_v4  ;;  %2211 = vst.msk [vmem:[%s2577_s27 + $0x30] sm:$0xff] %vm2204_vm3, %v2153_v53 }
 0x4e3   : > { %v2159_v60 = vpop.xlane.xlu1 %2158  ;;  %v2157_v34 = vpop.xlane.xlu0 %2156 }
 0x4e4   : > { %2214 = vst.msk [vmem:[%s2577_s27 + $0x48] sm:$0xff] %vm2204_vm3, %v2159_v60  ;;  %2213 = vst.msk [vmem:[%s2577_s27 + $0x40] sm:$0xff] %vm2204_vm3, %v2157_v34 }
 0x4e7   : > { %v2163_v39 = vpop.xlane.xlu1 %2162  ;;  %v2161_v46 = vpop.xlane.xlu0 %2160 }
 0x4e8   : > { %2216 = vst.msk [vmem:[%s2577_s27 + $0x58] sm:$0xff] %vm2204_vm3, %v2163_v39  ;;  %2215 = vst.msk [vmem:[%s2577_s27 + $0x50] sm:$0xff] %vm2204_vm3, %v2161_v46 }
 0x4eb   : > { %v2167_v14 = vpop.xlane.xlu1 %2166  ;;  %v2165_v19 = vpop.xlane.xlu0 %2164 }
 0x4ec   : > { %2218 = vst.msk [vmem:[%s2577_s27 + $0x68] sm:$0xff] %vm2204_vm3, %v2167_v14  ;;  %2217 = vst.msk [vmem:[%s2577_s27 + $0x60] sm:$0xff] %vm2204_vm3, %v2165_v19 }
 0x4ef   : > { %v2171_v0 = vpop.xlane.xlu1 %2170  ;;  %v2169_v56 = vpop.xlane.xlu0 %2168 }
 0x4f0   : > { %2220 = vst.msk [vmem:[%s2577_s27 + $0x78] sm:$0xff] %vm2204_vm3, %v2171_v0  ;;  %2219 = vst.msk [vmem:[%s2577_s27 + $0x70] sm:$0xff] %vm2204_vm3, %v2169_v56 }
 0x4f3   : > { %v2175_v37 = vpop.xlane.xlu1 %2174  ;;  %v2173_v16 = vpop.xlane.xlu0 %2172 }
 0x4f4   : > { %2222 = vst.msk [vmem:[%s2577_s27 + $0x88] sm:$0xff] %vm2204_vm3, %v2175_v37  ;;  %2221 = vst.msk [vmem:[%s2577_s27 + $0x80] sm:$0xff] %vm2204_vm3, %v2173_v16 }
 0x4f7   : > { %v2179_v28 = vpop.xlane.xlu1 %2178  ;;  %v2177_v55 = vpop.xlane.xlu0 %2176 }
 0x4f8   : > { %2224 = vst.msk [vmem:[%s2577_s27 + $0x98] sm:$0xff] %vm2204_vm3, %v2179_v28  ;;  %2223 = vst.msk [vmem:[%s2577_s27 + $0x90] sm:$0xff] %vm2204_vm3, %v2177_v55 }
 0x4fb   : > { %v2183_v24 = vpop.xlane.xlu1 %2182  ;;  %v2181_v50 = vpop.xlane.xlu0 %2180 }
 0x4fc   : > { %2226 = vst.msk [vmem:[%s2577_s27 + $0xa8] sm:$0xff] %vm2204_vm3, %v2183_v24  ;;  %2225 = vst.msk [vmem:[%s2577_s27 + $0xa0] sm:$0xff] %vm2204_vm3, %v2181_v50 }
 0x4ff   : > { %v2187_v13 = vpop.xlane.xlu1 %2186  ;;  %v2185_v36 = vpop.xlane.xlu0 %2184 }
 0x500   : > { %2228 = vst.msk [vmem:[%s2577_s27 + $0xb8] sm:$0xff] %vm2204_vm3, %v2187_v13  ;;  %2227 = vst.msk [vmem:[%s2577_s27 + $0xb0] sm:$0xff] %vm2204_vm3, %v2185_v36 }
 0x503   : > { %v2191_v52 = vpop.xlane.xlu1 %2190  ;;  %v2189_v22 = vpop.xlane.xlu0 %2188 }
 0x504   : > { %2230 = vst.msk [vmem:[%s2577_s27 + $0xc8] sm:$0xff] %vm2204_vm3, %v2191_v52  ;;  %2229 = vst.msk [vmem:[%s2577_s27 + $0xc0] sm:$0xff] %vm2204_vm3, %v2189_v22 }
 0x507   : > { %v2195_v29 = vpop.xlane.xlu1 %2194  ;;  %v2193_v35 = vpop.xlane.xlu0 %2192 }
 0x508   : > { %2232 = vst.msk [vmem:[%s2577_s27 + $0xd8] sm:$0xff] %vm2204_vm3, %v2195_v29  ;;  %2231 = vst.msk [vmem:[%s2577_s27 + $0xd0] sm:$0xff] %vm2204_vm3, %v2193_v35 }
 0x50b   : > { %v2199_v32 = vpop.xlane.xlu1 %2198  ;;  %v2197_v23 = vpop.xlane.xlu0 %2196 }
 0x50c   : > { %2234 = vst.msk [vmem:[%s2577_s27 + $0xe8] sm:$0xff] %vm2204_vm3, %v2199_v32  ;;  %2233 = vst.msk [vmem:[%s2577_s27 + $0xe0] sm:$0xff] %vm2204_vm3, %v2197_v23 }
 0x50f   : > { %v2203_v54 = vpop.xlane.xlu1 %2202  ;;  %v2201_v30 = vpop.xlane.xlu0 %2200 }
 0x510   : > { %2236 = vst.msk [vmem:[%s2577_s27 + $0xf8] sm:$0xff] %vm2204_vm3, %v2203_v54  ;;  %2235 = vst.msk [vmem:[%s2577_s27 + $0xf0] sm:$0xff] %vm2204_vm3, %v2201_v30 }
 0x511 PF: > { %s19_s13 = sadd.s32 1, %s2472_s13   ;;  %s3830_s30 = smov %s2464_s11 }
 0x512   : > { %p16_p9 = scmp.ge.s32.totalorder %s19_s13, 8   ;;  %s3831_s10 = smov %s2468_s12 }
 0x513   : > { %s3832_s11 = smov %s3835_s14  ;;  %s3833_s12 = smov %s3839_s15 }
 0x514   :  { %18 = sbr.rel (!%p16_p9) target bundleno = 3 (0x3), region = 96 }

</bundles_post_ra>
